<compile_context>
chip_gen: v6e
topology: v6e:2x2x1
jax: 0.10.0
libtpu: 0.0.40
codegen_flags: <defaults>
</compile_context>

<pallas_src>
import functools

import jax
import jax.numpy as jnp
from jax.experimental import pallas as pl
from jax.experimental.pallas import tpu as pltpu

EPS = 1e-5


# ----------------------------------------------------------------------------
# Fused kernel: one image + its meta row per grid step, batch axis "parallel".
# ----------------------------------------------------------------------------
def _effnet_meta_kernel(patches_ref, xm_ref,
                        stem_w_ref, stem_b_ref, dw_w_ref, dw_b_ref,
                        pw_w_ref, pw_b_ref,
                        w1_ref, b1_ref, w2_ref, b2_ref,
                        wf_feat_ref, wf_meta_ref, fb_ref,
                        o_ref, pad_ref, *, Ho, Wo):
    c1 = dw_w_ref.shape[1]

    # ---- stem conv3x3/s2 as one bf16 MXU matmul over im2col patches
    #      (BN scale folded into weight columns), f32 acc, +bias, SiLU.
    stem = jnp.dot(patches_ref[0], stem_w_ref[...],
                   preferred_element_type=jnp.float32)            # (Ho*Wo, c1)
    stem = stem + stem_b_ref[...]
    stem = stem * jax.nn.sigmoid(stem)                            # SiLU (f32)

    # ---- depthwise 3x3 / stride 1 / pad 1, fused in-kernel.
    #      Zero-padded VMEM scratch (padded in H and W); each of the 9 taps is
    #      a static slice of the scratch.  No roll, no edge masks.
    pad_ref[...] = jnp.zeros_like(pad_ref)
    pad_ref[1:Ho + 1, 1:Wo + 1, :] = stem.reshape(Ho, Wo, c1)

    w_dw = dw_w_ref[...]                                          # (9, c1)
    acc = jnp.zeros((Ho, Wo, c1), jnp.float32)
    for di in range(3):
        for dj in range(3):
            k = 3 * di + dj
            tap = pad_ref[di:di + Ho, dj:dj + Wo, :]              # (Ho, Wo, c1)
            acc = acc + tap * w_dw[k:k + 1, :]
    dwy = acc + dw_b_ref[...]
    dwy = dwy * jax.nn.sigmoid(dwy)                               # (Ho, Wo, c1)

    # ---- pointwise 1x1 conv: bf16 MXU matmul, f32 acc, +bias, SiLU.
    pw = jnp.dot(dwy.reshape(Ho * Wo, c1).astype(jnp.bfloat16), pw_w_ref[...],
                 preferred_element_type=jnp.float32)              # (Ho*Wo, c2)
    pw = pw + pw_b_ref[...]
    pw = pw * jax.nn.sigmoid(pw)

    # ---- global average pool over this image's pixels -> (1, c2)
    feat = jnp.sum(pw, axis=0, keepdims=True) * (1.0 / (Ho * Wo))

    # ---- meta MLP: Linear + folded BN + SiLU, twice.
    m = jnp.dot(xm_ref[0].astype(jnp.bfloat16), w1_ref[...],
                preferred_element_type=jnp.float32) + b1_ref[...]
    m = m * jax.nn.sigmoid(m)
    m = jnp.dot(m.astype(jnp.bfloat16), w2_ref[...],
                preferred_element_type=jnp.float32) + b2_ref[...]
    m = m * jax.nn.sigmoid(m)                                     # (1, h2)

    # ---- concat([feat, m]) @ fc_w  ==  feat @ fc_w[:c2] + m @ fc_w[c2:]
    out = jnp.dot(feat.astype(jnp.bfloat16), wf_feat_ref[...],
                  preferred_element_type=jnp.float32)
    out = out + jnp.dot(m.astype(jnp.bfloat16), wf_meta_ref[...],
                        preferred_element_type=jnp.float32)
    o_ref[0] = (out + fb_ref[...]).astype(o_ref.dtype)


def effnet_meta_forward(p, x_nchw, x_meta):
    # NCHW (PyTorch) -> NHWC, channels on the 128-lane axis.
    x = jnp.transpose(x_nchw, (0, 2, 3, 1)).astype(jnp.float32)
    B, H, W, _ = x.shape
    Ho = (H + 2 - 3) // 2 + 1
    Wo = (W + 2 - 3) // 2 + 1
    c1 = p["stem_w"].shape[1]
    c2 = p["pw_w"].shape[1]
    n_meta = p["meta1_w"].shape[0]
    h1 = p["meta1_w"].shape[1]
    h2 = p["meta2_w"].shape[1]
    out_dim = p["fc_w_meta"].shape[1]

    # Stem im2col on the tiny 3-channel input only (offset-major,
    # channel-minor to match stem_w layout); negligible HBM traffic.
    xp = jnp.pad(x, ((0, 0), (1, 1), (1, 1), (0, 0)))
    cols = [xp[:, i:i + 2 * Ho:2, j:j + 2 * Wo:2, :]
            for i in range(3) for j in range(3)]
    patches = jnp.concatenate(cols, axis=-1).reshape(B, Ho * Wo, 27)
    patches = patches.astype(jnp.bfloat16)

    xm = x_meta.astype(jnp.float32).reshape(B, 1, n_meta)

    kern = functools.partial(_effnet_meta_kernel, Ho=Ho, Wo=Wo)
    out = pl.pallas_call(
        kern,
        out_shape=jax.ShapeDtypeStruct((B, 1, out_dim), jnp.float32),
        grid=(B,),
        in_specs=[
            pl.BlockSpec((1, Ho * Wo, 27), lambda b: (b, 0, 0)),
            pl.BlockSpec((1, 1, n_meta), lambda b: (b, 0, 0)),
            pl.BlockSpec((27, c1), lambda b: (0, 0)),
            pl.BlockSpec((1, c1), lambda b: (0, 0)),
            pl.BlockSpec((9, c1), lambda b: (0, 0)),
            pl.BlockSpec((1, c1), lambda b: (0, 0)),
            pl.BlockSpec((c1, c2), lambda b: (0, 0)),
            pl.BlockSpec((1, c2), lambda b: (0, 0)),
            pl.BlockSpec((n_meta, h1), lambda b: (0, 0)),
            pl.BlockSpec((1, h1), lambda b: (0, 0)),
            pl.BlockSpec((h1, h2), lambda b: (0, 0)),
            pl.BlockSpec((1, h2), lambda b: (0, 0)),
            pl.BlockSpec((c2, out_dim), lambda b: (0, 0)),
            pl.BlockSpec((h2, out_dim), lambda b: (0, 0)),
            pl.BlockSpec((1, out_dim), lambda b: (0, 0)),
        ],
        out_specs=pl.BlockSpec((1, 1, out_dim), lambda b: (b, 0, 0)),
        scratch_shapes=[pltpu.VMEM((Ho + 2, Wo + 2, c1), jnp.float32)],
        compiler_params=pltpu.CompilerParams(
            dimension_semantics=("parallel",)),
    )(patches, xm, p["stem_w"], p["stem_b"], p["dw_w"], p["dw_b"],
      p["pw_w"], p["pw_b"], p["meta1_w"], p["meta1_b"],
      p["meta2_w"], p["meta2_b"], p["fc_w_feat"], p["fc_w_meta"], p["fc_b"])
    return out.reshape(B, out_dim)


# ----------------------------------------------------------------------------
# Parameters (deterministic, synthetic) with BatchNorm folded into weights.
# ----------------------------------------------------------------------------
def fold_bn(gamma, beta, mean, var, linear_bias=None):
    s = gamma / jnp.sqrt(var + EPS)
    b = beta - mean * s
    if linear_bias is not None:
        b = b + linear_bias * s
    return s, b


def make_params(key, n_meta_features, out_dim, c1=128, c2=128):
    ks = jax.random.split(key, 16)
    p = {}

    def bn_stats(k, n):
        k1, k2, k3, k4 = jax.random.split(k, 4)
        gamma = 1.0 + 0.05 * jax.random.normal(k1, (n,))
        beta = 0.05 * jax.random.normal(k2, (n,))
        mean = 0.05 * jax.random.normal(k3, (n,))
        var = 1.0 + 0.05 * jax.random.uniform(k4, (n,))
        return gamma, beta, mean, var

    # stem conv 3x3 s2 (3 -> c1), no conv bias; BN scale folded into columns.
    w = 0.1 * jax.random.normal(ks[0], (3, 3, 3, c1))     # (kh, kw, Cin, Cout)
    s, b = fold_bn(*bn_stats(ks[1], c1))
    p["stem_w"] = (w.reshape(27, c1) * s[None, :]).astype(jnp.bfloat16)
    p["stem_b"] = b[None, :].astype(jnp.float32)

    # depthwise conv 3x3 s1 (c1 -> c1); stays f32 (pure VPU path).
    w = 0.1 * jax.random.normal(ks[2], (9, c1))
    s, b = fold_bn(*bn_stats(ks[3], c1))
    p["dw_w"] = (w * s[None, :]).astype(jnp.float32)
    p["dw_b"] = b[None, :].astype(jnp.float32)

    # pointwise conv 1x1 (c1 -> c2).
    w = 0.1 * jax.random.normal(ks[4], (c1, c2))
    s, b = fold_bn(*bn_stats(ks[5], c2))
    p["pw_w"] = (w * s[None, :]).astype(jnp.bfloat16)
    p["pw_b"] = b[None, :].astype(jnp.float32)

    # meta: Linear(n_meta, 512) + BN + SiLU.
    h1, h2 = 512, 128
    w = 0.05 * jax.random.normal(ks[6], (n_meta_features, h1))
    lb = 0.05 * jax.random.normal(ks[7], (h1,))
    s, b = fold_bn(*bn_stats(ks[8], h1), linear_bias=lb)
    p["meta1_w"] = (w * s[None, :]).astype(jnp.bfloat16)
    p["meta1_b"] = b[None, :].astype(jnp.float32)

    # meta: Linear(512, 128) + BN + SiLU.
    w = 0.05 * jax.random.normal(ks[9], (h1, h2))
    lb = 0.05 * jax.random.normal(ks[10], (h2,))
    s, b = fold_bn(*bn_stats(ks[11], h2), linear_bias=lb)
    p["meta2_w"] = (w * s[None, :]).astype(jnp.bfloat16)
    p["meta2_b"] = b[None, :].astype(jnp.float32)

    # myfc: Linear(c2 + 128, out_dim), split so the concat becomes two matmuls.
    w = 0.05 * jax.random.normal(ks[12], (c2 + h2, out_dim))
    p["fc_w_feat"] = w[:c2].astype(jnp.bfloat16)
    p["fc_w_meta"] = w[c2:].astype(jnp.bfloat16)
    p["fc_b"] = (0.05 * jax.random.normal(ks[13], (out_dim,)))[None, :].astype(
        jnp.float32)
    return p


if __name__ == "__main__":
    key = jax.random.PRNGKey(0)
    k_par, k_img, k_meta = jax.random.split(key, 3)

    N_META = 8
    OUT_DIM = 4
    params = make_params(k_par, n_meta_features=N_META, out_dim=OUT_DIM)

    x = jax.random.normal(k_img, (2, 3, 16, 16), dtype=jnp.float32)  # NCHW
    x_meta = jax.random.normal(k_meta, (2, N_META), dtype=jnp.float32)

    fwd = jax.jit(effnet_meta_forward)
    out = fwd(params, x, x_meta)
    jax.block_until_ready(out)
    assert out.shape == (2, OUT_DIM)
    print("KERNEL_OK")
</pallas_src>

<mosaic_0001>
module attributes {stable_mosaic.version = 11 : i64} {
  func.func @_effnet_meta_kernel(%arg0: i32, %arg1: memref<1x64x27xbf16, #tpu.memory_space<vmem>>, %arg2: memref<1x1x8xf32, #tpu.memory_space<vmem>>, %arg3: memref<27x128xbf16, #tpu.memory_space<vmem>>, %arg4: memref<1x128xf32, #tpu.memory_space<vmem>>, %arg5: memref<9x128xf32, #tpu.memory_space<vmem>>, %arg6: memref<1x128xf32, #tpu.memory_space<vmem>>, %arg7: memref<128x128xbf16, #tpu.memory_space<vmem>>, %arg8: memref<1x128xf32, #tpu.memory_space<vmem>>, %arg9: memref<8x512xbf16, #tpu.memory_space<vmem>>, %arg10: memref<1x512xf32, #tpu.memory_space<vmem>>, %arg11: memref<512x128xbf16, #tpu.memory_space<vmem>>, %arg12: memref<1x128xf32, #tpu.memory_space<vmem>>, %arg13: memref<128x4xbf16, #tpu.memory_space<vmem>>, %arg14: memref<128x4xbf16, #tpu.memory_space<vmem>>, %arg15: memref<1x4xf32, #tpu.memory_space<vmem>>, %arg16: memref<1x1x4xf32, #tpu.memory_space<vmem>>, %arg17: memref<10x10x128xf32, #tpu.memory_space<vmem>>) attributes {dimension_semantics = [#tpu.dimension_semantics<parallel>], iteration_bounds = array<i64: 2>, scalar_prefetch = 0 : i64, scratch_operands = 1 : i64, tpu.core_type = #tpu.core_type<tc>, window_params = [{transform_indices = @transform_0, window_bounds = array<i64: 1, 64, 27>}, {transform_indices = @transform_1, window_bounds = array<i64: 1, 1, 8>}, {pipeline_mode = #tpu.pipeline_mode<synchronous>, transform_indices = @transform_2, window_bounds = array<i64: 27, 128>}, {pipeline_mode = #tpu.pipeline_mode<synchronous>, transform_indices = @transform_3, window_bounds = array<i64: 1, 128>}, {pipeline_mode = #tpu.pipeline_mode<synchronous>, transform_indices = @transform_4, window_bounds = array<i64: 9, 128>}, {pipeline_mode = #tpu.pipeline_mode<synchronous>, transform_indices = @transform_5, window_bounds = array<i64: 1, 128>}, {pipeline_mode = #tpu.pipeline_mode<synchronous>, transform_indices = @transform_6, window_bounds = array<i64: 128, 128>}, {pipeline_mode = #tpu.pipeline_mode<synchronous>, transform_indices = @transform_7, window_bounds = array<i64: 1, 128>}, {pipeline_mode = #tpu.pipeline_mode<synchronous>, transform_indices = @transform_8, window_bounds = array<i64: 8, 512>}, {pipeline_mode = #tpu.pipeline_mode<synchronous>, transform_indices = @transform_9, window_bounds = array<i64: 1, 512>}, {pipeline_mode = #tpu.pipeline_mode<synchronous>, transform_indices = @transform_10, window_bounds = array<i64: 512, 128>}, {pipeline_mode = #tpu.pipeline_mode<synchronous>, transform_indices = @transform_11, window_bounds = array<i64: 1, 128>}, {pipeline_mode = #tpu.pipeline_mode<synchronous>, transform_indices = @transform_12, window_bounds = array<i64: 128, 4>}, {pipeline_mode = #tpu.pipeline_mode<synchronous>, transform_indices = @transform_13, window_bounds = array<i64: 128, 4>}, {pipeline_mode = #tpu.pipeline_mode<synchronous>, transform_indices = @transform_14, window_bounds = array<i64: 1, 4>}, {transform_indices = @transform_15, window_bounds = array<i64: 1, 1, 4>}]} {
    %c0 = arith.constant 0 : index
    %c0_0 = arith.constant 0 : index
    %c0_1 = arith.constant 0 : index
    %0 = vector.load %arg1[%c0, %c0_0, %c0_1] : memref<1x64x27xbf16, #tpu.memory_space<vmem>>, vector<1x64x27xbf16>
    %1 = vector.shape_cast %0 : vector<1x64x27xbf16> to vector<64x27xbf16>
    %c0_2 = arith.constant 0 : index
    %c0_3 = arith.constant 0 : index
    %2 = vector.load %arg3[%c0_2, %c0_3] : memref<27x128xbf16, #tpu.memory_space<vmem>>, vector<27x128xbf16>
    %cst = arith.constant dense<0.000000e+00> : vector<64x128xf32>
    %3 = tpu.matmul %1, %2, %cst {dimension_numbers = #tpu.dot_dimension_numbers<[1], [0], [0], [1], [0, 0, 1, 1], [], []>} : vector<64x27xbf16>, vector<27x128xbf16>, vector<64x128xf32> -> vector<64x128xf32>
    %c0_4 = arith.constant 0 : index
    %c0_5 = arith.constant 0 : index
    %4 = vector.load %arg4[%c0_4, %c0_5] : memref<1x128xf32, #tpu.memory_space<vmem>>, vector<1x128xf32>
    %5 = vector.broadcast %4 : vector<1x128xf32> to vector<64x128xf32>
    %6 = arith.addf %3, %5 : vector<64x128xf32>
    %7 = arith.negf %6 : vector<64x128xf32>
    %8 = math.exp %7 : vector<64x128xf32>
    %cst_6 = arith.constant 1.000000e+00 : f32
    %9 = vector.broadcast %cst_6 : f32 to vector<64x128xf32>
    %10 = arith.addf %9, %8 : vector<64x128xf32>
    %11 = arith.divf %9, %10 : vector<64x128xf32>
    %12 = arith.mulf %6, %11 : vector<64x128xf32>
    %cst_7 = arith.constant 0.000000e+00 : f32
    %13 = vector.broadcast %cst_7 : f32 to vector<10x10x128xf32>
    %c0_8 = arith.constant 0 : index
    %c0_9 = arith.constant 0 : index
    %c0_10 = arith.constant 0 : index
    %14 = vector.load %arg17[%c0_8, %c0_9, %c0_10] : memref<10x10x128xf32, #tpu.memory_space<vmem>>, vector<10x10x128xf32>
    tpu.vector_store %arg17[%c0_8, %c0_9, %c0_10], %13 {strides = array<i32>} : memref<10x10x128xf32, #tpu.memory_space<vmem>>, vector<10x10x128xf32>,
    %15 = vector.shape_cast %12 : vector<64x128xf32> to vector<8x8x128xf32>
    %c1 = arith.constant 1 : index
    %c1_11 = arith.constant 1 : index
    %c0_12 = arith.constant 0 : index
    %16 = vector.load %arg17[%c1, %c1_11, %c0_12] : memref<10x10x128xf32, #tpu.memory_space<vmem>>, vector<8x8x128xf32>
    tpu.vector_store %arg17[%c1, %c1_11, %c0_12], %15 {strides = array<i32>} : memref<10x10x128xf32, #tpu.memory_space<vmem>>, vector<8x8x128xf32>,
    %c0_13 = arith.constant 0 : index
    %c0_14 = arith.constant 0 : index
    %17 = vector.load %arg5[%c0_13, %c0_14] : memref<9x128xf32, #tpu.memory_space<vmem>>, vector<9x128xf32>
    %cst_15 = arith.constant 0.000000e+00 : f32
    %18 = vector.broadcast %cst_15 : f32 to vector<8x8x128xf32>
    %c0_16 = arith.constant 0 : index
    %c0_17 = arith.constant 0 : index
    %c0_18 = arith.constant 0 : index
    %19 = vector.load %arg17[%c0_16, %c0_17, %c0_18] : memref<10x10x128xf32, #tpu.memory_space<vmem>>, vector<8x8x128xf32>
    %20 = vector.extract_strided_slice %17 {offsets = [0, 0], sizes = [1, 128], strides = [1, 1]} : vector<9x128xf32> to vector<1x128xf32>
    %21 = vector.shape_cast %20 : vector<1x128xf32> to vector<1x1x128xf32>
    %22 = vector.broadcast %21 : vector<1x1x128xf32> to vector<8x8x128xf32>
    %23 = arith.mulf %19, %22 : vector<8x8x128xf32>
    %24 = arith.addf %18, %23 : vector<8x8x128xf32>
    %c0_19 = arith.constant 0 : index
    %c1_20 = arith.constant 1 : index
    %c0_21 = arith.constant 0 : index
    %25 = vector.load %arg17[%c0_19, %c1_20, %c0_21] : memref<10x10x128xf32, #tpu.memory_space<vmem>>, vector<8x8x128xf32>
    %26 = vector.extract_strided_slice %17 {offsets = [1, 0], sizes = [1, 128], strides = [1, 1]} : vector<9x128xf32> to vector<1x128xf32>
    %27 = vector.shape_cast %26 : vector<1x128xf32> to vector<1x1x128xf32>
    %28 = vector.broadcast %27 : vector<1x1x128xf32> to vector<8x8x128xf32>
    %29 = arith.mulf %25, %28 : vector<8x8x128xf32>
    %30 = arith.addf %24, %29 : vector<8x8x128xf32>
    %c0_22 = arith.constant 0 : index
    %c2 = arith.constant 2 : index
    %c0_23 = arith.constant 0 : index
    %31 = vector.load %arg17[%c0_22, %c2, %c0_23] : memref<10x10x128xf32, #tpu.memory_space<vmem>>, vector<8x8x128xf32>
    %32 = vector.extract_strided_slice %17 {offsets = [2, 0], sizes = [1, 128], strides = [1, 1]} : vector<9x128xf32> to vector<1x128xf32>
    %33 = vector.shape_cast %32 : vector<1x128xf32> to vector<1x1x128xf32>
    %34 = vector.broadcast %33 : vector<1x1x128xf32> to vector<8x8x128xf32>
    %35 = arith.mulf %31, %34 : vector<8x8x128xf32>
    %36 = arith.addf %30, %35 : vector<8x8x128xf32>
    %c1_24 = arith.constant 1 : index
    %c0_25 = arith.constant 0 : index
    %c0_26 = arith.constant 0 : index
    %37 = vector.load %arg17[%c1_24, %c0_25, %c0_26] : memref<10x10x128xf32, #tpu.memory_space<vmem>>, vector<8x8x128xf32>
    %38 = vector.extract_strided_slice %17 {offsets = [3, 0], sizes = [1, 128], strides = [1, 1]} : vector<9x128xf32> to vector<1x128xf32>
    %39 = vector.shape_cast %38 : vector<1x128xf32> to vector<1x1x128xf32>
    %40 = vector.broadcast %39 : vector<1x1x128xf32> to vector<8x8x128xf32>
    %41 = arith.mulf %37, %40 : vector<8x8x128xf32>
    %42 = arith.addf %36, %41 : vector<8x8x128xf32>
    %c1_27 = arith.constant 1 : index
    %c1_28 = arith.constant 1 : index
    %c0_29 = arith.constant 0 : index
    %43 = vector.load %arg17[%c1_27, %c1_28, %c0_29] : memref<10x10x128xf32, #tpu.memory_space<vmem>>, vector<8x8x128xf32>
    %44 = vector.extract_strided_slice %17 {offsets = [4, 0], sizes = [1, 128], strides = [1, 1]} : vector<9x128xf32> to vector<1x128xf32>
    %45 = vector.shape_cast %44 : vector<1x128xf32> to vector<1x1x128xf32>
    %46 = vector.broadcast %45 : vector<1x1x128xf32> to vector<8x8x128xf32>
    %47 = arith.mulf %43, %46 : vector<8x8x128xf32>
    %48 = arith.addf %42, %47 : vector<8x8x128xf32>
    %c1_30 = arith.constant 1 : index
    %c2_31 = arith.constant 2 : index
    %c0_32 = arith.constant 0 : index
    %49 = vector.load %arg17[%c1_30, %c2_31, %c0_32] : memref<10x10x128xf32, #tpu.memory_space<vmem>>, vector<8x8x128xf32>
    %50 = vector.extract_strided_slice %17 {offsets = [5, 0], sizes = [1, 128], strides = [1, 1]} : vector<9x128xf32> to vector<1x128xf32>
    %51 = vector.shape_cast %50 : vector<1x128xf32> to vector<1x1x128xf32>
    %52 = vector.broadcast %51 : vector<1x1x128xf32> to vector<8x8x128xf32>
    %53 = arith.mulf %49, %52 : vector<8x8x128xf32>
    %54 = arith.addf %48, %53 : vector<8x8x128xf32>
    %c2_33 = arith.constant 2 : index
    %c0_34 = arith.constant 0 : index
    %c0_35 = arith.constant 0 : index
    %55 = vector.load %arg17[%c2_33, %c0_34, %c0_35] : memref<10x10x128xf32, #tpu.memory_space<vmem>>, vector<8x8x128xf32>
    %56 = vector.extract_strided_slice %17 {offsets = [6, 0], sizes = [1, 128], strides = [1, 1]} : vector<9x128xf32> to vector<1x128xf32>
    %57 = vector.shape_cast %56 : vector<1x128xf32> to vector<1x1x128xf32>
    %58 = vector.broadcast %57 : vector<1x1x128xf32> to vector<8x8x128xf32>
    %59 = arith.mulf %55, %58 : vector<8x8x128xf32>
    %60 = arith.addf %54, %59 : vector<8x8x128xf32>
    %c2_36 = arith.constant 2 : index
    %c1_37 = arith.constant 1 : index
    %c0_38 = arith.constant 0 : index
    %61 = vector.load %arg17[%c2_36, %c1_37, %c0_38] : memref<10x10x128xf32, #tpu.memory_space<vmem>>, vector<8x8x128xf32>
    %62 = vector.extract_strided_slice %17 {offsets = [7, 0], sizes = [1, 128], strides = [1, 1]} : vector<9x128xf32> to vector<1x128xf32>
    %63 = vector.shape_cast %62 : vector<1x128xf32> to vector<1x1x128xf32>
    %64 = vector.broadcast %63 : vector<1x1x128xf32> to vector<8x8x128xf32>
    %65 = arith.mulf %61, %64 : vector<8x8x128xf32>
    %66 = arith.addf %60, %65 : vector<8x8x128xf32>
    %c2_39 = arith.constant 2 : index
    %c2_40 = arith.constant 2 : index
    %c0_41 = arith.constant 0 : index
    %67 = vector.load %arg17[%c2_39, %c2_40, %c0_41] : memref<10x10x128xf32, #tpu.memory_space<vmem>>, vector<8x8x128xf32>
    %68 = vector.extract_strided_slice %17 {offsets = [8, 0], sizes = [1, 128], strides = [1, 1]} : vector<9x128xf32> to vector<1x128xf32>
    %69 = vector.shape_cast %68 : vector<1x128xf32> to vector<1x1x128xf32>
    %70 = vector.broadcast %69 : vector<1x1x128xf32> to vector<8x8x128xf32>
    %71 = arith.mulf %67, %70 : vector<8x8x128xf32>
    %72 = arith.addf %66, %71 : vector<8x8x128xf32>
    %c0_42 = arith.constant 0 : index
    %c0_43 = arith.constant 0 : index
    %73 = vector.load %arg6[%c0_42, %c0_43] : memref<1x128xf32, #tpu.memory_space<vmem>>, vector<1x128xf32>
    %74 = vector.shape_cast %73 : vector<1x128xf32> to vector<1x1x128xf32>
    %75 = vector.broadcast %74 : vector<1x1x128xf32> to vector<8x8x128xf32>
    %76 = arith.addf %72, %75 : vector<8x8x128xf32>
    %77 = arith.negf %76 : vector<8x8x128xf32>
    %78 = math.exp %77 : vector<8x8x128xf32>
    %cst_44 = arith.constant 1.000000e+00 : f32
    %79 = vector.broadcast %cst_44 : f32 to vector<8x8x128xf32>
    %80 = arith.addf %79, %78 : vector<8x8x128xf32>
    %81 = arith.divf %79, %80 : vector<8x8x128xf32>
    %82 = arith.mulf %76, %81 : vector<8x8x128xf32>
    %83 = vector.shape_cast %82 : vector<8x8x128xf32> to vector<64x128xf32>
    %84 = arith.truncf %83 : vector<64x128xf32> to vector<64x128xbf16>
    %c0_45 = arith.constant 0 : index
    %c0_46 = arith.constant 0 : index
    %85 = vector.load %arg7[%c0_45, %c0_46] : memref<128x128xbf16, #tpu.memory_space<vmem>>, vector<128x128xbf16>
    %cst_47 = arith.constant dense<0.000000e+00> : vector<64x128xf32>
    %86 = tpu.matmul %84, %85, %cst_47 {dimension_numbers = #tpu.dot_dimension_numbers<[1], [0], [0], [1], [0, 0, 1, 1], [], []>} : vector<64x128xbf16>, vector<128x128xbf16>, vector<64x128xf32> -> vector<64x128xf32>
    %c0_48 = arith.constant 0 : index
    %c0_49 = arith.constant 0 : index
    %87 = vector.load %arg8[%c0_48, %c0_49] : memref<1x128xf32, #tpu.memory_space<vmem>>, vector<1x128xf32>
    %88 = vector.broadcast %87 : vector<1x128xf32> to vector<64x128xf32>
    %89 = arith.addf %86, %88 : vector<64x128xf32>
    %90 = arith.negf %89 : vector<64x128xf32>
    %91 = math.exp %90 : vector<64x128xf32>
    %cst_50 = arith.constant 1.000000e+00 : f32
    %92 = vector.broadcast %cst_50 : f32 to vector<64x128xf32>
    %93 = arith.addf %92, %91 : vector<64x128xf32>
    %94 = arith.divf %92, %93 : vector<64x128xf32>
    %95 = arith.mulf %89, %94 : vector<64x128xf32>
    %cst_51 = arith.constant dense<0.000000e+00> : vector<128xf32>
    %96 = vector.multi_reduction <add>, %95, %cst_51 [0] : vector<64x128xf32> to vector<128xf32>
    %97 = vector.shape_cast %96 : vector<128xf32> to vector<1x128xf32>
    %cst_52 = arith.constant 1.562500e-02 : f32
    %98 = vector.broadcast %cst_52 : f32 to vector<1x128xf32>
    %99 = arith.mulf %97, %98 : vector<1x128xf32>
    %c0_53 = arith.constant 0 : index
    %c0_54 = arith.constant 0 : index
    %c0_55 = arith.constant 0 : index
    %100 = vector.load %arg2[%c0_53, %c0_54, %c0_55] : memref<1x1x8xf32, #tpu.memory_space<vmem>>, vector<1x1x8xf32>
    %101 = vector.shape_cast %100 : vector<1x1x8xf32> to vector<1x8xf32>
    %102 = arith.truncf %101 : vector<1x8xf32> to vector<1x8xbf16>
    %c0_56 = arith.constant 0 : index
    %c0_57 = arith.constant 0 : index
    %103 = vector.load %arg9[%c0_56, %c0_57] : memref<8x512xbf16, #tpu.memory_space<vmem>>, vector<8x512xbf16>
    %cst_58 = arith.constant dense<0.000000e+00> : vector<1x512xf32>
    %104 = tpu.matmul %102, %103, %cst_58 {dimension_numbers = #tpu.dot_dimension_numbers<[1], [0], [0], [1], [0, 0, 1, 1], [], []>} : vector<1x8xbf16>, vector<8x512xbf16>, vector<1x512xf32> -> vector<1x512xf32>
    %c0_59 = arith.constant 0 : index
    %c0_60 = arith.constant 0 : index
    %105 = vector.load %arg10[%c0_59, %c0_60] : memref<1x512xf32, #tpu.memory_space<vmem>>, vector<1x512xf32>
    %106 = arith.addf %104, %105 : vector<1x512xf32>
    %107 = arith.negf %106 : vector<1x512xf32>
    %108 = math.exp %107 : vector<1x512xf32>
    %cst_61 = arith.constant 1.000000e+00 : f32
    %109 = vector.broadcast %cst_61 : f32 to vector<1x512xf32>
    %110 = arith.addf %109, %108 : vector<1x512xf32>
    %111 = arith.divf %109, %110 : vector<1x512xf32>
    %112 = arith.mulf %106, %111 : vector<1x512xf32>
    %113 = arith.truncf %112 : vector<1x512xf32> to vector<1x512xbf16>
    %c0_62 = arith.constant 0 : index
    %c0_63 = arith.constant 0 : index
    %114 = vector.load %arg11[%c0_62, %c0_63] : memref<512x128xbf16, #tpu.memory_space<vmem>>, vector<512x128xbf16>
    %cst_64 = arith.constant dense<0.000000e+00> : vector<1x128xf32>
    %115 = tpu.matmul %113, %114, %cst_64 {dimension_numbers = #tpu.dot_dimension_numbers<[1], [0], [0], [1], [0, 0, 1, 1], [], []>} : vector<1x512xbf16>, vector<512x128xbf16>, vector<1x128xf32> -> vector<1x128xf32>
    %c0_65 = arith.constant 0 : index
    %c0_66 = arith.constant 0 : index
    %116 = vector.load %arg12[%c0_65, %c0_66] : memref<1x128xf32, #tpu.memory_space<vmem>>, vector<1x128xf32>
    %117 = arith.addf %115, %116 : vector<1x128xf32>
    %118 = arith.negf %117 : vector<1x128xf32>
    %119 = math.exp %118 : vector<1x128xf32>
    %cst_67 = arith.constant 1.000000e+00 : f32
    %120 = vector.broadcast %cst_67 : f32 to vector<1x128xf32>
    %121 = arith.addf %120, %119 : vector<1x128xf32>
    %122 = arith.divf %120, %121 : vector<1x128xf32>
    %123 = arith.mulf %117, %122 : vector<1x128xf32>
    %124 = arith.truncf %99 : vector<1x128xf32> to vector<1x128xbf16>
    %c0_68 = arith.constant 0 : index
    %c0_69 = arith.constant 0 : index
    %125 = vector.load %arg13[%c0_68, %c0_69] : memref<128x4xbf16, #tpu.memory_space<vmem>>, vector<128x4xbf16>
    %cst_70 = arith.constant dense<0.000000e+00> : vector<1x4xf32>
    %126 = tpu.matmul %124, %125, %cst_70 {dimension_numbers = #tpu.dot_dimension_numbers<[1], [0], [0], [1], [0, 0, 1, 1], [], []>} : vector<1x128xbf16>, vector<128x4xbf16>, vector<1x4xf32> -> vector<1x4xf32>
    %127 = arith.truncf %123 : vector<1x128xf32> to vector<1x128xbf16>
    %c0_71 = arith.constant 0 : index
    %c0_72 = arith.constant 0 : index
    %128 = vector.load %arg14[%c0_71, %c0_72] : memref<128x4xbf16, #tpu.memory_space<vmem>>, vector<128x4xbf16>
    %cst_73 = arith.constant dense<0.000000e+00> : vector<1x4xf32>
    %129 = tpu.matmul %127, %128, %cst_73 {dimension_numbers = #tpu.dot_dimension_numbers<[1], [0], [0], [1], [0, 0, 1, 1], [], []>} : vector<1x128xbf16>, vector<128x4xbf16>, vector<1x4xf32> -> vector<1x4xf32>
    %130 = arith.addf %126, %129 : vector<1x4xf32>
    %c0_74 = arith.constant 0 : index
    %c0_75 = arith.constant 0 : index
    %131 = vector.load %arg15[%c0_74, %c0_75] : memref<1x4xf32, #tpu.memory_space<vmem>>, vector<1x4xf32>
    %132 = arith.addf %130, %131 : vector<1x4xf32>
    %c0_76 = arith.constant 0 : index
    %c0_77 = arith.constant 0 : index
    %c0_78 = arith.constant 0 : index
    %133 = vector.load %arg16[%c0_76, %c0_77, %c0_78] : memref<1x1x4xf32, #tpu.memory_space<vmem>>, vector<1x1x4xf32>
    %134 = vector.shape_cast %133 : vector<1x1x4xf32> to vector<1x4xf32>
    %135 = vector.shape_cast %132 : vector<1x4xf32> to vector<1x1x4xf32>
    tpu.vector_store %arg16[%c0_76, %c0_77, %c0_78], %135 {strides = array<i32>} : memref<1x1x4xf32, #tpu.memory_space<vmem>>, vector<1x1x4xf32>,
    return
  }
  func.func @transform_0(%arg0: i32) -> (i32, i32, i32) {
    %c0_i32 = arith.constant 0 : i32
    %c0_i32_0 = arith.constant 0 : i32
    %c0_i32_1 = arith.constant 0 : i32
    return %arg0, %c0_i32, %c0_i32_0 : i32, i32, i32
  }
  func.func @transform_1(%arg0: i32) -> (i32, i32, i32) {
    %c0_i32 = arith.constant 0 : i32
    %c0_i32_0 = arith.constant 0 : i32
    %c0_i32_1 = arith.constant 0 : i32
    return %arg0, %c0_i32, %c0_i32_0 : i32, i32, i32
  }
  func.func @transform_2(%arg0: i32) -> (i32, i32) {
    %c0_i32 = arith.constant 0 : i32
    %c0_i32_0 = arith.constant 0 : i32
    %c0_i32_1 = arith.constant 0 : i32
    return %c0_i32, %c0_i32_0 : i32, i32
  }
  func.func @transform_3(%arg0: i32) -> (i32, i32) {
    %c0_i32 = arith.constant 0 : i32
    %c0_i32_0 = arith.constant 0 : i32
    %c0_i32_1 = arith.constant 0 : i32
    return %c0_i32, %c0_i32_0 : i32, i32
  }
  func.func @transform_4(%arg0: i32) -> (i32, i32) {
    %c0_i32 = arith.constant 0 : i32
    %c0_i32_0 = arith.constant 0 : i32
    %c0_i32_1 = arith.constant 0 : i32
    return %c0_i32, %c0_i32_0 : i32, i32
  }
  func.func @transform_5(%arg0: i32) -> (i32, i32) {
    %c0_i32 = arith.constant 0 : i32
    %c0_i32_0 = arith.constant 0 : i32
    %c0_i32_1 = arith.constant 0 : i32
    return %c0_i32, %c0_i32_0 : i32, i32
  }
  func.func @transform_6(%arg0: i32) -> (i32, i32) {
    %c0_i32 = arith.constant 0 : i32
    %c0_i32_0 = arith.constant 0 : i32
    %c0_i32_1 = arith.constant 0 : i32
    return %c0_i32, %c0_i32_0 : i32, i32
  }
  func.func @transform_7(%arg0: i32) -> (i32, i32) {
    %c0_i32 = arith.constant 0 : i32
    %c0_i32_0 = arith.constant 0 : i32
    %c0_i32_1 = arith.constant 0 : i32
    return %c0_i32, %c0_i32_0 : i32, i32
  }
  func.func @transform_8(%arg0: i32) -> (i32, i32) {
    %c0_i32 = arith.constant 0 : i32
    %c0_i32_0 = arith.constant 0 : i32
    %c0_i32_1 = arith.constant 0 : i32
    return %c0_i32, %c0_i32_0 : i32, i32
  }
  func.func @transform_9(%arg0: i32) -> (i32, i32) {
    %c0_i32 = arith.constant 0 : i32
    %c0_i32_0 = arith.constant 0 : i32
    %c0_i32_1 = arith.constant 0 : i32
    return %c0_i32, %c0_i32_0 : i32, i32
  }
  func.func @transform_10(%arg0: i32) -> (i32, i32) {
    %c0_i32 = arith.constant 0 : i32
    %c0_i32_0 = arith.constant 0 : i32
    %c0_i32_1 = arith.constant 0 : i32
    return %c0_i32, %c0_i32_0 : i32, i32
  }
  func.func @transform_11(%arg0: i32) -> (i32, i32) {
    %c0_i32 = arith.constant 0 : i32
    %c0_i32_0 = arith.constant 0 : i32
    %c0_i32_1 = arith.constant 0 : i32
    return %c0_i32, %c0_i32_0 : i32, i32
  }
  func.func @transform_12(%arg0: i32) -> (i32, i32) {
    %c0_i32 = arith.constant 0 : i32
    %c0_i32_0 = arith.constant 0 : i32
    %c0_i32_1 = arith.constant 0 : i32
    return %c0_i32, %c0_i32_0 : i32, i32
  }
  func.func @transform_13(%arg0: i32) -> (i32, i32) {
    %c0_i32 = arith.constant 0 : i32
    %c0_i32_0 = arith.constant 0 : i32
    %c0_i32_1 = arith.constant 0 : i32
    return %c0_i32, %c0_i32_0 : i32, i32
  }
  func.func @transform_14(%arg0: i32) -> (i32, i32) {
    %c0_i32 = arith.constant 0 : i32
    %c0_i32_0 = arith.constant 0 : i32
    %c0_i32_1 = arith.constant 0 : i32
    return %c0_i32, %c0_i32_0 : i32, i32
  }
  func.func @transform_15(%arg0: i32) -> (i32, i32, i32) {
    %c0_i32 = arith.constant 0 : i32
    %c0_i32_0 = arith.constant 0 : i32
    %c0_i32_1 = arith.constant 0 : i32
    return %arg0, %c0_i32, %c0_i32_0 : i32, i32, i32
  }
}

</mosaic_0001>

<bundles_post_ra>
// kernel: effnet_meta_forward.1
= control target key start
LH: loop header
LB: loop body
LE: loop exit
PB: predicated region body
PF: predicated region fallthrough
CT: control target
= control target key end

     0   :  { %20 = vsyncpa [#allocation4], 0  ;;  %s3315_s0 = inlined_call_operand.vmem [shape: bf16[2,64,27], index: 0, kind: input, shape index: {}]   ;;  %s3316_s1 = inlined_call_operand.vmem [shape: f32[2,1,8], index: 1, kind: input, shape index: {}]   ;;  %s3317_s2 = inlined_call_operand.vmem [shape: bf16[27,128], index: 2, kind: input, shape index: {}]   ;;  %s3318_s3 = inlined_call_operand.vmem [shape: f32[1,128], index: 3, kind: input, shape index: {}]   ;;  %s3319_s4 = inlined_call_operand.vmem [shape: f32[9,128], index: 4, kind: input, shape index: {}]   ;;  %s3320_s5 = inlined_call_operand.vmem [shape: f32[1,128], index: 5, kind: input, shape index: {}]   ;;  %s3321_s6 = inlined_call_operand.vmem [shape: bf16[128,128], index: 6, kind: input, shape index: {}]   ;;  %s3322_s7 = inlined_call_operand.vmem [shape: f32[1,128], index: 7, kind: input, shape index: {}]   ;;  %s3323_s8 = inlined_call_operand.vmem [shape: bf16[8,512], index: 8, kind: input, shape index: {}]   ;;  %s3324_s9 = inlined_call_operand.vmem [shape: f32[1,512], index: 9, kind: input, shape index: {}]   ;;  %s3325_s10 = inlined_call_operand.vmem [shape: bf16[512,128], index: 10, kind: input, shape index: {}]   ;;  %s3326_s11 = inlined_call_operand.vmem [shape: f32[1,128], index: 11, kind: input, shape index: {}]   ;;  %s3327_s12 = inlined_call_operand.vmem [shape: bf16[128,4], index: 12, kind: input, shape index: {}]   ;;  %s3328_s13 = inlined_call_operand.vmem [shape: bf16[128,4], index: 13, kind: input, shape index: {}]   ;;  %s3329_s14 = inlined_call_operand.vmem [shape: f32[1,4], index: 14, kind: input, shape index: {}]   ;;  %s3330_s15 = inlined_call_operand.hbm [shape: f32[2,1,4], index: 15, kind: output, shape index: {}]  }
   0x1   :  { %22 = vsyncpa [#allocation4 + $0x1], 0  ;;  %s2711_s18 = smov 0   ;;  %s2713_s19 = smov 0  }
   0x2   :  { %s2715_s20 = smov 0   ;;  %s2717_s21 = smov 0  }
   0x3 LB: > { %3336 = sst [smem:[#allocation6_spill]] %s2612_s18  ;;  %s2732_s22 = sadd.s32 4294967295, %s2624_s21   ;;  %s2624_s21 = sphi %s2717_s21, %s3345_s21   ;;  %s2620_s20 = sphi %s2715_s20, %s3350_s20   ;;  %s2616_s19 = sphi %s2713_s19, %s3349_s19   ;;  %s2612_s18 = sphi %s2711_s18, %s3348_s18  }
   0x4   : > { %3337 = sst [smem:[#allocation7_spill]] %s2620_s20  ;;  %s2065_s23 = sadd.s32 4294967294, %s2624_s21  }
   0x5   : > { %s2736_s24 = sadd.s32 1, %s2624_s21   ;;  %s360_s25 = sadd.s32 1, %s2620_s20 }
   0x6   : > { %3338 = sst [smem:[#allocation8_spill]] %s2736_s24  ;;  %s357_s26 = ssub.s32 %s2624_s21, %s2736_s24 }
   0x7   : > { %p370_p0 = scmp.ne.s32.totalorder %s2620_s20, %s2616_s19  ;;  %p358_p1 = scmp.eq.s32.totalorder %s357_s26, 0 }
   0x8   : > { %p371_p2 = scmp.eq.s32.totalorder %s2732_s22, 1  ;;  %p376_p3 = scmp.ne.s32.totalorder %s2616_s19, %s2612_s18 }
   0x9   : > { %p377_p4 = scmp.eq.s32.totalorder %s2065_s23, 1  ;;  %p2068_p7 = scmp.ge.s32.totalorder %s2624_s21, 1 }
   0xa   : > { %s2747_s27 = scalar_select %p358_p1, %s2620_s20, %s360_s25  }
   0xb   : > { %p2749_p5 = por %p371_p2, %p370_p0  ;;  %p2753_p6 = por %p377_p4, %p376_p3 }
   0xc   : > { %3339 = sst [smem:[#allocation9_spill]] %s2747_s27  ;;  %p448_p8 = scmp.lt.s32.totalorder %s2624_s21, 3 }
   0xd   : > { %s3341_s29 = scalar_select %p2753_p6, 1, 0 }
   0xe   : > { %p449_p9 = pnand %p2068_p7, %p448_p8 }
   0xf   : > { %3342 = sst [smem:[#allocation10_spill]] %s3341_s29  ;;  %p498_p10 = scmp.lt.s32.totalorder (!%p449_p9), %s2732_s22, 1 }
  0x10   : > { %452 = sbr.rel (%p449_p9) target bundleno = 822 (0x336), region = 80  ;;  %s496_s26 = sand.u32 (!%p449_p9), 1, %s2616_s19  }
  0x11   : > { %s497_s24 = scalar_lea.vmem (!%p449_p9), [#allocation3], %s496_s26  ;;  %s2630_s25 = smov (!%p449_p9), [#allocation3]  }
  0x12   : > { %s2568_s30 = sshll.u32 (!%p449_p9), %s2630_s25, 4  ;;  %s2569_s30 = int_to_ptr.vmem [resolvable:$false] %s2568_s30 }
  0x13   : > { %s2570_s16 = scalar_lea.vmem (!%p449_p9), %s2569_s30, 32 }
  0x15   : > { %v2381_v0 = vld [vmem:[%s3317_s2 + $0x8] sm:$0x3f]   ;;  %vm570_vm0 = vcmask 1044480   ;;  %vm571_vm1 = vcmask 1045504   ;;  %v2626_v1 = vmov 65535   ;;  %v1265_v4 = vld [vmem:[%s3323_s8] sm:$0xff]  ;;  %v737_v54 = vlaneseq }
  0x16   : > { %v572_v2 = vsel %vm570_vm0, 4294967295, %v2626_v1  ;;  %v2382_v6 = vld [vmem:[%s3317_s2] sm:$0xff]   ;;  %s499_s27 = scalar_select %p498_p10, %s2732_s22, 1  ;;  %v1266_v7 = vld [vmem:[%s3323_s8 + $0x8] sm:$0xff]  ;;  %v2117_v8 = vcombine.low %v1265_v4, %v1265_v4  ;;  %vm557_vm2 = vcmask 220160   ;;  %vm1303_vm3 = vcmask 1043456  }
  0x17   : > { %v573_v3 = vsel %vm571_vm1, %v572_v2, 0  ;;  %v2119_v9 = vcombine.low %v1266_v7, %v1266_v7  ;;  %v2118_v11 = vcombine.high %v1265_v4, %v1265_v4  ;;  %v2120_v16 = vcombine.high %v1266_v7, %v1266_v7  ;;  %v2391_v22 = vld [vmem:[%s3325_s10 + $0x78] sm:$0xff]   ;;  %v2393_v24 = vld [vmem:[%s3325_s10 + $0x70] sm:$0xff]   ;;  %v2395_v26 = vld [vmem:[%s3325_s10 + $0x68] sm:$0xff]  }
  0x18   : > { %v575_v5 = vand.u32 %v2381_v0, %v573_v3  ;;  %s2181_s20 = sshll.u32 %s499_s27, 5  ;;  %v1305_v13 = vsel %vm1303_vm3, %v2117_v8, 0  ;;  %s505_s29 = scalar_lea.vmem %s3316_s1, %s499_s27  ;;  %vm1299_vm4 = vcmask 64512   ;;  %v2627_v19 = vmov 0   ;;  %v2392_v23 = vld [vmem:[%s3325_s10 + $0x38] sm:$0xff]   ;;  %v2394_v25 = vld [vmem:[%s3325_s10 + $0x30] sm:$0xff]  }
  0x19   : > { %s502_s18 = scalar_lea.vmem %s3315_s0, %s2181_s20  ;;  %v1311_v15 = vsel %vm1303_vm3, %v2119_v9, 0  ;;  %v1263_v18 = vld [vmem:[%s505_s29] sm:$0x1]  ;;  %v2628_v21 = vmov 0.0   ;;  %v2396_v27 = vld [vmem:[%s3325_s10 + $0x28] sm:$0xff]   ;;  %v2400_v29 = vld [vmem:[%s3321_s6 + $0x38] sm:$0xff]  }
  0x1a   : > { %2262 = vmatprep.subr.bf16.mxu0 %v575_v5  ;;  %v2383_v10 = vld [vmem:[%s502_s18] sm:$0xff]   ;;  %v2384_v12 = vld [vmem:[%s502_s18 + $0x8] sm:$0xff]   ;;  %v2385_v14 = vld [vmem:[%s502_s18 + $0x10] sm:$0xff]   ;;  %v1264_v20 = vpack.c.bf16 %v1263_v18, %v1263_v18  ;;  %704 = vst [vmem:[#allocation2 + $0x30] sm:$0xff] %v2628_v21  ;;  %2274 = vmatprep.subr.bf16.mxu1 %v2400_v29  ;;  %v2897_v61 = vshrl.u32 %v737_v54, 7  ;;  %vm2629_vm5 = vmmov 0  }
  0x1b   : > { %2263 = vmatpush3.bf16.msra.mxu0 %v575_v5  ;;  %2266 = vmatprep.mubr.msk.bf16.mxu0 %vm557_vm2, %v2383_v10  ;;  %v2386_v17 = vld [vmem:[%s502_s18 + $0x18] sm:$0xff]   ;;  %705 = vst [vmem:[#allocation2 + $0x38] sm:$0x3] %v2628_v21  ;;  %698 = vst [vmem:[#allocation2] sm:$0xff] %v2628_v21  ;;  %v2397_v28 = vld [vmem:[%s3325_s10 + $0x60] sm:$0xff]   ;;  %s2178_s20 = sshll.u32 %s2732_s22, 4 }
  0x1c   : > { %2264 = vmatprep.subr.bf16.mxu0 %v2382_v6  ;;  %699 = vst [vmem:[#allocation2 + $0x8] sm:$0x3] %v2628_v21  ;;  %700 = vst [vmem:[#allocation2 + $0x10] sm:$0xff] %v2628_v21  ;;  %v2398_v30 = vld [vmem:[%s3325_s10 + $0x20] sm:$0xff]   ;;  %v2403_v31 = vld [vmem:[%s3321_s6 + $0x30] sm:$0xff]   ;;  %2275 = vmatpush3.bf16.msra.mxu1 %v2400_v29  ;;  %v739_v4 = vsub.s32 0, %v2897_v61  ;;  %s3274_s17 = scalar_lea.hbm %s3330_s15, %s2178_s20 }
  0x1d   : > { %701 = vst [vmem:[#allocation2 + $0x18] sm:$0x3] %v2628_v21  ;;  %702 = vst [vmem:[#allocation2 + $0x20] sm:$0xff] %v2628_v21  ;;  %v2399_v32 = vld [vmem:[%s3325_s10 + $0x58] sm:$0xff]   ;;  %2276 = vmatprep.subr.bf16.mxu1 %v2403_v31  ;;  %v2406_v33 = vld [vmem:[%s3321_s6 + $0x28] sm:$0xff]   ;;  %s2001_s29 = sshll.u32 %s497_s24, 4  ;;  %s3276_s29 = int_to_ptr.vmem [resolvable:$true] %s2001_s29 }
  0x1e   : > { %703 = vst [vmem:[#allocation2 + $0x28] sm:$0x3] %v2628_v21  ;;  %706 = vst [vmem:[#allocation2 + $0x40] sm:$0xff] %v2628_v21  ;;  %v2401_v34 = vld [vmem:[%s3325_s10 + $0x18] sm:$0xff]   ;;  %v2402_v35 = vld [vmem:[%s3325_s10 + $0x50] sm:$0xff]   ;;  %vm1986_vm6 = vcmask 24576   ;;  %p2571_p0 = scmp.lt.s32.totalorder %s3276_s29, %s2569_s30 }
  0x1f   : > { %2265 = vmatpush3.bf16.msra.mxu0 %v2382_v6  ;;  %707 = vst [vmem:[#allocation2 + $0x48] sm:$0x3] %v2628_v21  ;;  %708 = vst [vmem:[#allocation2 + $0x50] sm:$0xff] %v2628_v21  ;;  %v2409_v36 = vld [vmem:[%s3321_s6 + $0x20] sm:$0xff]   ;;  %v2404_v37 = vld [vmem:[%s3325_s10 + $0x10] sm:$0xff]   ;;  %v767_v6 = vsub.s32 1, %v2897_v61 }
  0x20   : > { %2121 = vmatprep.subr.msk.bf16.mxu0 %vm1303_vm3, %v2118_v11  ;;  %709 = vst [vmem:[#allocation2 + $0x58] sm:$0x3] %v2628_v21  ;;  %710 = vst [vmem:[#allocation2 + $0x60] sm:$0xff] %v2628_v21  ;;  %2277 = vmatpush3.bf16.msra.mxu1 %v2403_v31  ;;  %v2405_v38 = vld [vmem:[%s3325_s10 + $0x48] sm:$0xff]   ;;  %v2411_v39 = vld [vmem:[%s3321_s6 + $0x18] sm:$0xff]   ;;  %s1989_s22 = scalar_lea.sflag [#allocation4], %s496_s26 }
  0x21   : > { %711 = vst [vmem:[#allocation2 + $0x68] sm:$0x3] %v2628_v21  ;;  %712 = vst [vmem:[#allocation2 + $0x70] sm:$0xff] %v2628_v21  ;;  %2278 = vmatprep.subr.bf16.mxu1 %v2406_v33  ;;  %v2407_v40 = vld [vmem:[%s3325_s10 + $0x8] sm:$0xff]   ;;  %v2408_v41 = vld [vmem:[%s3325_s10 + $0x40] sm:$0xff]   ;;  %s2564_s23 = scalar_lea.vmem %s3276_s29, 16 }
  0x22   : > { %2267 = vmatmul.mubr.msk.bf16.vlgmr.msra.gmra.mxu0 %vm557_vm2, %v2384_v12  ;;  %713 = vst [vmem:[#allocation2 + $0x78] sm:$0x3] %v2628_v21  ;;  %714 = vst [vmem:[#allocation2 + $0x80] sm:$0xff] %v2628_v21  ;;  %v2412_v42 = vld [vmem:[%s3321_s6 + $0x10] sm:$0xff]   ;;  %v2410_v43 = vld [vmem:[%s3325_s10] sm:$0xff]   ;;  %p2565_p11 = scmp.ne.s32.totalorder %s3276_s29, %s2564_s23  ;;  %p2572_p1 = scmp.lt.s32.totalorder %s2570_s16, %s2564_s23 }
  0x23   : > { %2270 = vmatprep.mubr.msk.bf16.mxu0 %vm557_vm2, %v2385_v14  ;;  %1331 = vmatpush1.bf16.msra.mxu0 %v1305_v13  ;;  %715 = vst [vmem:[#allocation2 + $0x88] sm:$0x3] %v2628_v21  ;;  %716 = vst [vmem:[#allocation2 + $0x90] sm:$0xff] %v2628_v21  ;;  %v2413_v44 = vld [vmem:[%s3321_s6 + $0x8] sm:$0xff]   ;;  %v2414_v45 = vld [vmem:[%s3321_s6] sm:$0xff]  }
  0x24   : > { %2123 = vmatprep.subr.msk.bf16.mxu0 %vm1303_vm3, %v2120_v16  ;;  %717 = vst [vmem:[#allocation2 + $0x98] sm:$0x3] %v2628_v21  ;;  %2279 = vmatpush3.bf16.msra.mxu1 %v2406_v33  ;;  %v2415_v46 = vld [vmem:[%s3325_s10 + $0xf8] sm:$0xff]   ;;  %v2071_v47 = vld [vmem:[%s3318_s3] ss:$0 sm:$0xff]  ;;  %p2566_p12 = pnand %p2565_p11, %p2749_p5  ;;  %p2573_p2 = por %p2572_p1, %p2571_p0 }
  0x25   : > { %2280 = vmatprep.subr.bf16.mxu1 %v2409_v36  ;;  %v1267_v1 = vld [vmem:[%s3324_s9] sm:$0xf] }
  0x26   : > { %v1282_v9 = vrot.slane %v1267_v1, %v739_v4  ;;  %v1286_v13 = vrot.slane %v1267_v1, %v767_v6  ;;  %p2567_p13 = pneg %p2566_p12 }
  0x28   : > { %2281 = vmatpush3.bf16.msra.mxu1 %v2409_v36  ;;  %p2574_p3 = pnand %p2573_p2, %p2567_p13 }
  0x29   : > { %2282 = vmatprep.subr.bf16.mxu1 %v2411_v39 }
  0x2a   : > { %2271 = vmatmul.mubr.msk.bf16.gmra.mxu0 %vm557_vm2, %v2386_v17 }
  0x2b   : > { %1348 = vmatprep.mubr.bf16.mxu0 %v2627_v19 }
  0x2c   : > { %2283 = vmatpush3.bf16.msra.mxu1 %v2411_v39 }
  0x2d   : > { %2284 = vmatprep.subr.bf16.mxu1 %v2412_v42 }
  0x30   : > { %2285 = vmatpush3.bf16.msra.mxu1 %v2412_v42 }
  0x31   : > { %2286 = vmatprep.subr.bf16.mxu1 %v2413_v44 }
  0x32   : > { %2122 = vmatmul.mubr.msk.bf16.vlgmr.msra.gmra.mxu0 %vm1299_vm4, %v1264_v20 }
  0x33   : > { %1372 = vmatpush1.bf16.msra.mxu0 %v1311_v15  ;;  %1389 = vmatprep.mubr.bf16.mxu0 %v2627_v19  ;;  %v795_v19 = vsub.s32 2, %v2897_v61 }
  0x34   : > { %2200 = vmatprep.subr.bf16.mxu0 %v2391_v22  ;;  %2287 = vmatpush3.bf16.msra.mxu1 %v2413_v44 }
  0x35   : > { %2288 = vmatprep.subr.bf16.mxu1 %v2414_v45  ;;  %v1290_v29 = vrot.slane %v1267_v1, %v795_v19 }
  0x38   : > { %2289 = vmatpush3.bf16.msra.mxu1 %v2414_v45 }
  0x39   : > { %2222 = vmatprep.subr.bf16.mxu1 %v2415_v46  ;;  %v727_v46 = vld [vmem:[%s3319_s4] sm:$0xff] }
  0x3a   : > { %2124 = vmatmul.mubr.msk.bf16.vlgmr.msra.gmra.mxu0 %vm1299_vm4, %v1264_v20 }
  0x3b   : > { %2201 = vmatpush3.bf16.msra.mxu0 %v2392_v23 }
  0x3c   : > { %2202 = vmatprep.subr.bf16.mxu0 %v2393_v24 }
  0x3f   : > { %2203 = vmatpush3.bf16.msra.mxu0 %v2394_v25 }
  0x40   : > { %2204 = vmatprep.subr.bf16.mxu0 %v2395_v26  ;;  %v823_v26 = vsub.s32 3, %v2897_v61 }
  0x42   : > { %v1294_v33 = vrot.slane %v1267_v1, %v823_v26 }
  0x43   : > { %2205 = vmatpush3.bf16.msra.mxu0 %v2396_v27 }
  0x44   : > { %2206 = vmatprep.subr.bf16.mxu0 %v2397_v28 }
  0x47   : > { %2207 = vmatpush3.bf16.msra.mxu0 %v2398_v30 }
  0x48   : > { %2208 = vmatprep.subr.bf16.mxu0 %v2399_v32 }
  0x4b   : > { %2209 = vmatpush3.bf16.msra.mxu0 %v2401_v34 }
  0x4c   : > { %2210 = vmatprep.subr.bf16.mxu0 %v2402_v35 }
  0x4f   : > { %2211 = vmatpush3.bf16.msra.mxu0 %v2404_v37 }
  0x50   : > { %2212 = vmatprep.subr.bf16.mxu0 %v2405_v38 }
  0x53   : > { %2213 = vmatpush3.bf16.msra.mxu0 %v2407_v40 }
  0x54   : > { %2214 = vmatprep.subr.bf16.mxu0 %v2408_v41 }
  0x57   : > { %2215 = vmatpush3.bf16.msra.mxu0 %v2410_v43 }
  0x58   : > { %2298 = vmatprep.subr.bf16.mxu0 %v2628_v21 }
  0xe2   : > { %v2268_v48 = vpop.f32.mrf.mxu0 }
  0xe3   : > { %v2886_v49 = vadd.f32 %v2268_v48, %v2071_v47 }
  0xe4   : > { %v611_v50 = vpop.f32.mrf.mxu0 }
  0xe5   : > { %v2084_v51 = vmul.f32 -1.442695, %v2886_v49  ;;  %v2889_v52 = vadd.f32 %v2071_v47, %v611_v50  ;;  %v2934_v50 = vrot.slane %v727_v46, %v739_v4  ;;  %v851_v4 = vsub.s32 4, %v2897_v61 }
  0xe6   : > { %v2269_v53 = vpop.f32.mrf.mxu0 }
  0xe7   : > { %2447 = vpow2.f32 %v2084_v51  ;;  %v2082_v55 = vmul.f32 -1.442695, %v2889_v52  ;;  %v2892_v56 = vadd.f32 %v2269_v53, %v2071_v47  ;;  %v757_v53 = vld [vmem:[#allocation2 + $0x1] sm:$0xff] }
  0xe8   : > { %v614_v57 = vpop.f32.mrf.mxu0 }
  0xe9   : > { %2449 = vpow2.f32 %v2082_v55  ;;  %v2085_v58 = vmul.f32 -1.442695, %v2892_v56  ;;  %v2895_v59 = vadd.f32 %v2071_v47, %v614_v57  ;;  %v2936_v55 = vrot.slane %v727_v46, %v767_v6 }
  0xea   : > { %v2272_v60 = vpop.f32.mrf.mxu0 }
  0xeb   : > { %2451 = vpow2.f32 %v2085_v58  ;;  %v2083_v62 = vmul.f32 -1.442695, %v2895_v59  ;;  %v2900_v63 = vadd.f32 %v2272_v60, %v2071_v47  ;;  %v2938_v58 = vrot.slane %v727_v46, %v795_v19 }
  0xec   : > { %v627_v0 = vpop.f32.mrf.mxu0  ;;  %v769_v1 = vmul.f32 %v2936_v55, %v757_v53 }
  0xed   : > { %2453 = vpow2.f32 %v2083_v62  ;;  %v2088_v2 = vmul.f32 -1.442695, %v2900_v63  ;;  %v2906_v3 = vadd.f32 %v2071_v47, %v627_v0  ;;  %v741_v0 = vmul.f32 0.0, %v2934_v50 }
  0xee   : > { %v2273_v5 = vpop.f32.mrf.mxu0 }
  0xef   : > { %2455 = vpow2.f32 %v2088_v2  ;;  %v2086_v7 = vmul.f32 -1.442695, %v2906_v3  ;;  %v2911_v8 = vadd.f32 %v2273_v5, %v2071_v47  ;;  %v936_v5 = vsub.s32 7, %v2897_v61 }
  0xf0   : > { %v630_v10 = vpop.f32.mrf.mxu0 }
  0xf1   : > { %2457 = vpow2.f32 %v2086_v7  ;;  %v2089_v11 = vmul.f32 -1.442695, %v2911_v8  ;;  %v2914_v12 = vadd.f32 %v2071_v47, %v630_v10 }
  0xf2   : > { %v1350_v14 = vpop.f32.mrf.mxu0 }
  0xf3   : > { %2459 = vpow2.f32 %v2089_v11  ;;  %v2087_v15 = vmul.f32 -1.442695, %v2914_v12  ;;  %v2917_v16 = vadd.f32 %v1350_v14, %v1282_v9  ;;  %v785_v9 = vld [vmem:[#allocation2 + $0x2] sm:$0xff] }
  0xf4   : > { %v2448_v17 = vpop.eup %2447  ;;  %v1352_v18 = vpop.f32.mrf.mxu0 }
  0xf5   : > { %v668_v20 = vadd.f32 1.0, %v2448_v17  ;;  %2461 = vpow2.f32 %v2087_v15  ;;  %v2125_v22 = vmul.f32 -1.442695, %v2917_v16  ;;  %v2921_v23 = vadd.f32 %v1352_v18, %v1286_v13 }
  0xf6   : > { %v2450_v24 = vpop.eup %2449  ;;  %v1354_v25 = vpop.f32.mrf.mxu0  ;;  %v879_v13 = vsub.s32 5, %v2897_v61  ;;  %v908_v15 = vsub.s32 6, %v2897_v61  ;;  %v777_v17 = vadd.f32 %v769_v1, %v741_v0  ;;  %v797_v18 = vmul.f32 %v2938_v58, %v785_v9 }
  0xf7   : > { %2463 = vrcp.f32 %v668_v20  ;;  %v666_v27 = vadd.f32 1.0, %v2450_v24  ;;  %v2126_v28 = vmul.f32 -1.442695, %v2921_v23  ;;  %v2950_v20 = vrot.slane %v727_v46, %v851_v4 }
  0xf8   : > { %v2452_v30 = vpop.eup %2451  ;;  %2465 = vpow2.f32 %v2125_v22  ;;  %v1355_v31 = vpop.f32.mrf.mxu0  ;;  %v2952_v22 = vrot.slane %v727_v46, %v936_v5  ;;  %v2955_v25 = vrot.slane %v727_v46, %v879_v13 }
  0xf9   : > { %2467 = vrcp.f32 %v666_v27  ;;  %v669_v32 = vadd.f32 1.0, %v2452_v30  ;;  %v2960_v27 = vrot.slane %v727_v46, %v908_v15 }
  0xfa   : > { %v2454_v34 = vpop.eup %2453  ;;  %2469 = vpow2.f32 %v2126_v28  ;;  %v1391_v35 = vpop.f32.mrf.mxu0  ;;  %v2964_v28 = vrot.slane %v727_v46, %v823_v26  ;;  %v2996_v46 = vld [vmem:[%s3319_s4 + $0x8] ss:$0 sm:$0xff] }
  0xfb   : > { %2471 = vrcp.f32 %v669_v32  ;;  %v667_v36 = vadd.f32 1.0, %v2454_v34  ;;  %v2927_v37 = vadd.f32 %v1391_v35, %v1290_v29  ;;  %v805_v29 = vadd.f32 %v797_v18, %v777_v17 }
  0xfc   : > { %v2456_v38 = vpop.eup %2455  ;;  %v1393_v39 = vpop.f32.mrf.mxu0 }
  0xfd   : > { %2473 = vrcp.f32 %v667_v36  ;;  %v672_v40 = vadd.f32 1.0, %v2456_v38  ;;  %v2929_v41 = vadd.f32 %v1393_v39, %v1294_v33 }
  0xfe   : > { %v2458_v42 = vpop.eup %2457  ;;  %v1395_v43 = vpop.f32.mrf.mxu0 }
  0xff   : > { %2475 = vrcp.f32 %v672_v40  ;;  %v670_v44 = vadd.f32 1.0, %v2458_v42 }
 0x100   : > { %v2460_v45 = vpop.eup %2459  ;;  %v1396_v47 = vpop.f32.mrf.mxu0 }
 0x101   : > { %2477 = vrcp.f32 %v670_v44  ;;  %v673_v48 = vadd.f32 1.0, %v2460_v45 }
 0x102   : > { %v2462_v51 = vpop.eup %2461 }
 0x103   : > { %2479 = vrcp.f32 %v673_v48  ;;  %v671_v54 = vadd.f32 1.0, %v2462_v51 }
 0x104   : > { %v2464_v57 = vpop.eup %2463 }
 0x105   : > { %v2466_v60 = vpop.eup %2465  ;;  %v692_v62 = vmul.f32 %v2464_v57, %v2886_v49  ;;  %2481 = vrcp.f32 %v671_v54 }
 0x106   : > { %v2468_v2 = vpop.eup %2467  ;;  %v1410_v7 = vadd.f32 1.0, %v2466_v60 }
 0x107   : > { %v2470_v6 = vpop.eup %2469  ;;  %721 = vst [vmem:[#allocation2 + $0x31] sm:$0xff] %v692_v62  ;;  %v690_v10 = vmul.f32 %v2468_v2, %v2889_v52  ;;  %v772_v33 = vmul.f32 %v2936_v55, %v692_v62  ;;  %v2972_v34 = vmul.f32 %v2950_v20, %v692_v62 }
 0x108   : > { %v2472_v11 = vpop.eup %2471  ;;  %2483 = vrcp.f32 %v1410_v7  ;;  %v1411_v49 = vadd.f32 1.0, %v2470_v6 }
 0x109   : > { %719 = vst [vmem:[#allocation2 + $0x11] sm:$0xff] %v690_v10  ;;  %v693_v14 = vmul.f32 %v2472_v11, %v2892_v56  ;;  %v770_v31 = vmul.f32 %v2936_v55, %v690_v10  ;;  %v853_v61 = vmul.f32 %v2950_v20, %v690_v10 }
 0x10a   : > { %v2474_v19 = vpop.eup %2473  ;;  %2485 = vrcp.f32 %v1411_v49 }
 0x10b   : > { %722 = vst [vmem:[#allocation2 + $0x41] sm:$0xff] %v693_v14  ;;  %v691_v52 = vmul.f32 %v2474_v19, %v2895_v59  ;;  %v2968_v59 = vmul.f32 %v2952_v22, %v692_v62  ;;  %v856_v36 = vmul.f32 %v2950_v20, %v693_v14  ;;  %v2984_v44 = vmul.f32 %v2952_v22, %v693_v14 }
 0x10c   : > { %v2476_v24 = vpop.eup %2475 }
 0x10d   : > { %720 = vst [vmem:[#allocation2 + $0x21] sm:$0xff] %v691_v52  ;;  %v2958_v56 = vmul.f32 %v2476_v24, %v2900_v63  ;;  %v854_v42 = vmul.f32 %v2950_v20, %v691_v52  ;;  %v938_v43 = vmul.f32 %v2952_v22, %v691_v52  ;;  %v771_v51 = vmul.f32 %v2936_v55, %v691_v52 }
 0x10e   : > { %v2478_v30 = vpop.eup %2477  ;;  %v899_v32 = vld [vmem:[#allocation2 + $0x30] sm:$0xff] }
 0x10f   : > { %725 = vst [vmem:[#allocation2 + $0x71] sm:$0xff] %v2958_v56  ;;  %v2976_v63 = vmul.f32 %v2478_v30, %v2906_v3  ;;  %v955_v26 = vld [vmem:[#allocation2 + $0x32] sm:$0xff]  ;;  %v744_v35 = vmul.f32 %v899_v32, %v2934_v50  ;;  %v2987_v3 = vmul.f32 %v2936_v55, %v693_v14  ;;  %v911_v57 = vmul.f32 %v2960_v27, %v899_v32 }
 0x110   : > { %v2480_v38 = vpop.eup %2479  ;;  %v730_v39 = vld [vmem:[#allocation2 + $0x10] sm:$0xff]  ;;  %v967_v10 = vmul.f32 %v2996_v46, %v955_v26  ;;  %v827_v13 = vmul.f32 %v899_v32, %v2964_v28  ;;  %v883_v17 = vmul.f32 %v955_v26, %v2955_v25 }
 0x111   : > { %v786_v40 = vld [vmem:[#allocation2 + $0x12] sm:$0xff]  ;;  %723 = vst [vmem:[#allocation2 + $0x51] sm:$0xff] %v2976_v63  ;;  %v2991_v45 = vmul.f32 %v2480_v38, %v2911_v8  ;;  %v742_v47 = vmul.f32 %v2934_v50, %v730_v39  ;;  %v825_v48 = vmul.f32 %v2964_v28, %v730_v39  ;;  %v780_v60 = vadd.f32 %v772_v33, %v744_v35 }
 0x112   : > { %v2482_v53 = vpop.eup %2481  ;;  %v798_v54 = vmul.f32 %v2938_v58, %v786_v40  ;;  %v800_v8 = vmul.f32 %v955_v26, %v2938_v58  ;;  %v3004_v62 = vld [vmem:[#allocation2 + $0x40] sm:$0xff]  ;;  %v881_v6 = vmul.f32 %v2955_v25, %v786_v40 }
 0x113   : > { %726 = vst [vmem:[#allocation2 + $0x81] sm:$0xff] %v2991_v45  ;;  %v3008_v0 = vmul.f32 %v2482_v53, %v2914_v12  ;;  %v778_v1 = vadd.f32 %v770_v31, %v742_v47  ;;  %v833_v2 = vadd.f32 %v825_v48, %v805_v29  ;;  %v828_v4 = vmul.f32 %v2964_v28, %v3004_v62  ;;  %v3012_v5 = vld [vmem:[#allocation2 + $0x42] sm:$0xff] }
 0x114   : > { %v814_v7 = vld [vmem:[#allocation2 + $0x20] sm:$0xff]  ;;  %v808_v11 = vadd.f32 %v800_v8, %v780_v60  ;;  %v884_v24 = vmul.f32 %v2955_v25, %v3012_v5 }
 0x115   : > { %v870_v9 = vld [vmem:[#allocation2 + $0x22] sm:$0xff]  ;;  %v2484_v49 = vpop.eup %2483  ;;  %724 = vst [vmem:[#allocation2 + $0x61] sm:$0xff] %v3008_v0  ;;  %v806_v12 = vadd.f32 %v798_v54, %v778_v1  ;;  %v826_v14 = vmul.f32 %v2964_v28, %v814_v7  ;;  %v861_v15 = vadd.f32 %v853_v61, %v833_v2  ;;  %v743_v52 = vmul.f32 %v814_v7, %v2934_v50 }
 0x116   : > { %v1422_v18 = vmul.f32 %v2484_v49, %v2917_v16  ;;  %v882_v19 = vmul.f32 %v2955_v25, %v870_v9  ;;  %v910_v32 = vmul.f32 %v2960_v27, %v814_v7  ;;  %v836_v33 = vadd.f32 %v828_v4, %v808_v11 }
 0x117   : > { %v2486_v29 = vpop.eup %2485  ;;  %v834_v30 = vadd.f32 %v826_v14, %v806_v12  ;;  %v889_v31 = vadd.f32 %v881_v6, %v861_v15  ;;  %v779_v38 = vadd.f32 %v771_v51, %v743_v52  ;;  %v799_v26 = vmul.f32 %v870_v9, %v2938_v58 }
 0x118   : > { %v1426_v35 = vpack.c.bf16 %v1422_v18, %v1422_v18  ;;  %v1423_v61 = vmul.f32 %v2486_v29, %v2921_v23  ;;  %v901_v16 = vld [vmem:[#allocation2 + $0x50] sm:$0xff]  ;;  %v864_v47 = vadd.f32 %v856_v36, %v836_v33  ;;  %v966_v54 = vmul.f32 %v2996_v46, %v870_v9  ;;  %v3036_v36 = vld [vmem:[%s3320_s5] ss:$0 sm:$0xff] }
 0x119   : > { %v862_v39 = vadd.f32 %v854_v42, %v834_v30  ;;  %v918_v40 = vadd.f32 %v910_v32, %v889_v31  ;;  %v913_v48 = vmul.f32 %v2960_v27, %v901_v16  ;;  %v807_v60 = vadd.f32 %v799_v26, %v779_v38  ;;  %v957_v8 = vld [vmem:[#allocation2 + $0x52] sm:$0xff] }
 0x11a   : > { %v1427_v53 = vpack.c.bf16 %v1423_v61, %v1423_v61  ;;  %v745_v1 = vmul.f32 %v3004_v62, %v2934_v50  ;;  %v892_v23 = vadd.f32 %v884_v24, %v864_v47  ;;  %v746_v51 = vmul.f32 %v901_v16, %v2934_v50 }
 0x11b   : > { %v890_v2 = vadd.f32 %v882_v19, %v862_v39  ;;  %v946_v4 = vadd.f32 %v938_v43, %v918_v40  ;;  %v835_v42 = vadd.f32 %v827_v13, %v807_v60  ;;  %v941_v7 = vmul.f32 %v2952_v22, %v2976_v63 }
 0x11c   : > { %1719 = vmatprep.mubr.bf16.mxu0 %v1427_v53  ;;  %v774_v9 = vmul.f32 %v2936_v55, %v2976_v63  ;;  %v781_v6 = vadd.f32 %v2987_v3, %v745_v1  ;;  %v921_v49 = vadd.f32 %v913_v48, %v892_v23  ;;  %v969_v12 = vmul.f32 %v2996_v46, %v957_v8  ;;  %v818_v19 = vld [vmem:[#allocation2 + $0x60] sm:$0xff]  ;;  %v903_v53 = vld [vmem:[#allocation2 + $0x70] sm:$0xff] }
 0x11d   : > { %1720 = vmatmul.mubr.bf16.vlgmr.msra.gmra.mxu0 %v1426_v35  ;;  %v919_v43 = vadd.f32 %v911_v57, %v890_v2  ;;  %v974_v11 = vadd.f32 %v966_v54, %v946_v4  ;;  %v863_v14 = vadd.f32 %v2972_v34, %v835_v42  ;;  %v801_v13 = vmul.f32 %v3012_v5, %v2938_v58 }
 0x11e   : > { %v782_v15 = vadd.f32 %v774_v9, %v746_v51  ;;  %v802_v18 = vmul.f32 %v957_v8, %v2938_v58  ;;  %v949_v3 = vadd.f32 %v941_v7, %v921_v49  ;;  %v829_v57 = vmul.f32 %v901_v16, %v2964_v28  ;;  %2314 = vmatprep.mubr.msk.bf16.mxu0 %vm2629_vm5, %v2628_v21 }
 0x11f   : > { %v947_v52 = vadd.f32 %v2968_v59, %v919_v43  ;;  %v3050_v24 = vadd.f32 %v3036_v36, %v974_v11  ;;  %v891_v29 = vadd.f32 %v883_v17, %v863_v14  ;;  %v912_v30 = vmul.f32 %v2960_v27, %v3004_v62  ;;  %v874_v17 = vld [vmem:[#allocation2 + $0x62] sm:$0xff] }
 0x120   : > { %v809_v34 = vadd.f32 %v801_v13, %v781_v6  ;;  %v810_v31 = vadd.f32 %v802_v18, %v782_v15  ;;  %v977_v35 = vadd.f32 %v969_v12, %v949_v3  ;;  %v830_v61 = vmul.f32 %v2964_v28, %v818_v19  ;;  %v959_v6 = vld [vmem:[#allocation2 + $0x72] sm:$0xff] }
 0x121   : > { %v975_v32 = vadd.f32 %v967_v10, %v947_v52  ;;  %v2092_v33 = vmul.f32 -1.442695, %v3050_v24  ;;  %v920_v38 = vadd.f32 %v912_v30, %v891_v29  ;;  %v968_v59 = vmul.f32 %v2996_v46, %v3012_v5  ;;  %v820_v52 = vld [vmem:[#allocation2 + $0x80] sm:$0xff] }
 0x122   : > { %v837_v26 = vadd.f32 %v829_v57, %v809_v34  ;;  %v857_v16 = vmul.f32 %v2950_v20, %v2976_v63  ;;  %v3065_v62 = vadd.f32 %v3036_v36, %v977_v35  ;;  %v838_v10 = vadd.f32 %v830_v61, %v810_v31 }
 0x123   : > { %v3062_v39 = vadd.f32 %v3036_v36, %v975_v32  ;;  %2487 = vpow2.f32 %v2092_v33  ;;  %v948_v40 = vadd.f32 %v2984_v44, %v920_v38  ;;  %v858_v47 = vmul.f32 %v2950_v20, %v3008_v0 }
 0x124   : > { %v865_v48 = vadd.f32 %v857_v16, %v837_v26  ;;  %v885_v5 = vmul.f32 %v957_v8, %v2955_v25  ;;  %v2095_v54 = vmul.f32 -1.442695, %v3065_v62  ;;  %v886_v60 = vmul.f32 %v2955_v25, %v874_v17 }
 0x125   : > { %v2093_v63 = vmul.f32 -1.442695, %v3062_v39  ;;  %v976_v1 = vadd.f32 %v968_v59, %v948_v40  ;;  %v866_v2 = vadd.f32 %v858_v47, %v838_v10  ;;  %v914_v23 = vmul.f32 %v2960_v27, %v818_v19  ;;  %v876_v59 = vld [vmem:[#allocation2 + $0x82] sm:$0xff] }
 0x126   : > { %v893_v4 = vadd.f32 %v885_v5, %v865_v48  ;;  %v915_v44 = vmul.f32 %v2960_v27, %v903_v53  ;;  %v942_v51 = vmul.f32 %v2952_v22, %v3008_v0  ;;  %v943_v8 = vmul.f32 %v2952_v22, %v2958_v56  ;;  %v933_v5 = vld [vmem:[#allocation2 + $0x91] sm:$0xff] }
 0x127   : > { %2489 = vpow2.f32 %v2093_v63  ;;  %v3081_v42 = vadd.f32 %v3036_v36, %v976_v1  ;;  %v894_v7 = vadd.f32 %v886_v60, %v866_v2  ;;  %v970_v43 = vmul.f32 %v2996_v46, %v874_v17  ;;  %v961_v1 = vld [vmem:[#allocation2 + $0x92] sm:$0xff] }
 0x128   : > { %2491 = vpow2.f32 %v2095_v54  ;;  %v922_v9 = vadd.f32 %v914_v23, %v893_v4  ;;  %v747_v11 = vmul.f32 %v818_v19, %v2934_v50  ;;  %v748_v49 = vmul.f32 %v903_v53, %v2934_v50 }
 0x129   : > { %v775_v12 = vmul.f32 %v2936_v55, %v3008_v0  ;;  %v2094_v14 = vmul.f32 -1.442695, %v3081_v42  ;;  %v923_v15 = vadd.f32 %v915_v44, %v894_v7  ;;  %v776_v18 = vmul.f32 %v2936_v55, %v2958_v56 }
 0x12a   : > { %v950_v13 = vadd.f32 %v942_v51, %v922_v9  ;;  %v971_v3 = vmul.f32 %v2996_v46, %v959_v6  ;;  %v803_v29 = vmul.f32 %v874_v17, %v2938_v58  ;;  %v804_v19 = vmul.f32 %v959_v6, %v2938_v58 }
 0x12b   : > { %v783_v57 = vadd.f32 %v775_v12, %v747_v11  ;;  %2493 = vpow2.f32 %v2094_v14  ;;  %v951_v50 = vadd.f32 %v943_v8, %v923_v15  ;;  %v784_v34 = vadd.f32 %v776_v18, %v748_v49 }
 0x12c   : > { %v978_v30 = vadd.f32 %v970_v43, %v950_v13  ;;  %v831_v31 = vmul.f32 %v903_v53, %v2964_v28  ;;  %v832_v32 = vmul.f32 %v2964_v28, %v820_v52  ;;  %v859_v38 = vmul.f32 %v2950_v20, %v2958_v56 }
 0x12d   : > { %v811_v0 = vadd.f32 %v803_v29, %v783_v57  ;;  %v979_v33 = vadd.f32 %v971_v3, %v951_v50  ;;  %v812_v35 = vadd.f32 %v804_v19, %v784_v34  ;;  %v860_v28 = vmul.f32 %v2950_v20, %v2991_v45 }
 0x12e   : > { %v3097_v55 = vadd.f32 %v3036_v36, %v978_v30  ;;  %v887_v47 = vmul.f32 %v959_v6, %v2955_v25  ;;  %v917_v48 = vmul.f32 0.0, %v2960_v27  ;;  %v888_v63 = vmul.f32 %v2955_v25, %v876_v59 }
 0x12f   : > { %v839_v61 = vadd.f32 %v831_v31, %v811_v0  ;;  %v3102_v26 = vadd.f32 %v3036_v36, %v979_v33  ;;  %v840_v17 = vadd.f32 %v832_v32, %v812_v35  ;;  %v916_v60 = vmul.f32 %v2960_v27, %v820_v52 }
 0x130   : > { %v2488_v58 = vpop.eup %2487  ;;  %v2096_v16 = vmul.f32 -1.442695, %v3097_v55  ;;  %v2128_v20 = vmul.f32 -1.442695, %v2929_v41  ;;  %v945_v23 = vmul.f32 %v2952_v22, %v933_v5  ;;  %v944_v7 = vmul.f32 %v2952_v22, %v2991_v45  ;;  %v2420_v5 = vld [vmem:[%s3325_s10 + $0xa8] sm:$0xff]  }
 0x131   : > { %v1021_v10 = vadd.f32 1.0, %v2488_v58  ;;  %v867_v40 = vadd.f32 %v859_v38, %v839_v61  ;;  %v2097_v56 = vmul.f32 -1.442695, %v3102_v26  ;;  %v868_v53 = vadd.f32 %v860_v28, %v840_v17  ;;  %v2416_v38 = vld [vmem:[%s3325_s10 + $0xb8] sm:$0xff]  }
 0x132   : > { %2495 = vpow2.f32 %v2096_v16  ;;  %v973_v6 = vmul.f32 %v2996_v46, %v961_v1  ;;  %v972_v43 = vmul.f32 %v2996_v46, %v876_v59  ;;  %v2127_v46 = vmul.f32 -1.442695, %v2927_v37 }
 0x133   : > { %v895_v54 = vadd.f32 %v887_v47, %v867_v40  ;;  %2497 = vpow2.f32 %v2097_v56  ;;  %v896_v4 = vadd.f32 %v888_v63, %v868_v53  ;;  %v2421_v63 = vld [vmem:[%s3325_s10 + $0xe0] sm:$0xff]  }
 0x134   : > { %v2490_v2 = vpop.eup %2489  ;;  %2499 = vrcp.f32 %v1021_v10  ;;  %v2419_v10 = vld [vmem:[%s3325_s10 + $0xe8] sm:$0xff]  }
 0x135   : > { %v2492_v44 = vpop.eup %2491  ;;  %v1022_v51 = vadd.f32 1.0, %v2490_v2  ;;  %v924_v8 = vadd.f32 %v916_v60, %v895_v54  ;;  %v925_v25 = vadd.f32 %v917_v48, %v896_v4  ;;  %v2424_v60 = vld [vmem:[%s3325_s10 + $0x98] sm:$0xff]   ;;  %v2425_v2 = vld [vmem:[%s3325_s10 + $0xd0] sm:$0xff]  }
 0x136   : > { %v1024_v9 = vadd.f32 1.0, %v2492_v44 }
 0x137   : > { %2501 = vrcp.f32 %v1022_v51  ;;  %v952_v27 = vadd.f32 %v944_v7, %v924_v8  ;;  %v953_v11 = vadd.f32 %v945_v23, %v925_v25  ;;  %v2426_v51 = vld [vmem:[%s3325_s10 + $0x90] sm:$0xff]   ;;  %v2427_v7 = vld [vmem:[%s3325_s10 + $0xc8] sm:$0xff]   ;;  %v2429_v25 = vld [vmem:[%s3325_s10 + $0xc0] sm:$0xff]  }
 0x138   : > { %v2494_v49 = vpop.eup %2493  ;;  %2503 = vpow2.f32 %v2128_v20 }
 0x139   : > { %v980_v12 = vadd.f32 %v972_v43, %v952_v27  ;;  %v1023_v14 = vadd.f32 1.0, %v2494_v49  ;;  %2505 = vrcp.f32 %v1024_v9  ;;  %v981_v15 = vadd.f32 %v973_v6, %v953_v11  ;;  %v2430_v27 = vld [vmem:[%s3325_s10 + $0x80] sm:$0xff]   ;;  %v2431_v49 = vld [vmem:[%s3327_s12 + $0x38] sm:$0xff]  }
 0x13b   : > { %v3119_v13 = vadd.f32 %v3036_v36, %v980_v12  ;;  %2507 = vrcp.f32 %v1023_v14  ;;  %v3122_v22 = vadd.f32 %v3036_v36, %v981_v15  ;;  %v2432_v12 = vld [vmem:[%s3328_s13 + $0x38] sm:$0xff]   ;;  %v2434_v14 = vld [vmem:[%s3328_s13 + $0x30] sm:$0xff]   ;;  %v2435_v15 = vld [vmem:[%s3327_s12 + $0x28] sm:$0xff]  }
 0x13c   : > { %2299 = vmatpush3.bf16.msra.mxu0 %v2432_v12 }
 0x13d   : > { %v2098_v45 = vmul.f32 -1.442695, %v3119_v13  ;;  %v2099_v18 = vmul.f32 -1.442695, %v3122_v22  ;;  %2300 = vmatprep.subr.bf16.mxu0 %v2628_v21 }
 0x13f   : > { %v2496_v52 = vpop.eup %2495  ;;  %2509 = vpow2.f32 %v2098_v45  ;;  %v2437_v45 = vld [vmem:[%s3327_s12 + $0x20] sm:$0xff]  }
 0x140   : > { %v1025_v3 = vadd.f32 1.0, %v2496_v52  ;;  %2511 = vpow2.f32 %v2099_v18  ;;  %v2498_v57 = vpop.eup %2497  ;;  %2301 = vmatpush3.bf16.msra.mxu0 %v2434_v14  ;;  %v2563_v18 = vld [vmem:[#allocation2] sm:$0xff] }
 0x141   : > { %v2500_v29 = vpop.eup %2499  ;;  %v1026_v19 = vadd.f32 1.0, %v2498_v57  ;;  %2302 = vmatprep.subr.bf16.mxu0 %v2628_v21  ;;  %v2438_v52 = vld [vmem:[%s3328_s13 + $0x20] sm:$0xff]  }
 0x142   : > { %2513 = vrcp.f32 %v1025_v3  ;;  %v1045_v36 = vmul.f32 %v2500_v29, %v3050_v24  ;;  %v2417_v24 = vld [vmem:[%s3325_s10 + $0xf0] sm:$0xff]   ;;  %v2440_v29 = vld [vmem:[%s3328_s13 + $0x18] sm:$0xff]  }
 0x143   : > { %2515 = vpow2.f32 %v2127_v46 }
 0x144   : > { %v2502_v50 = vpop.eup %2501  ;;  %2517 = vrcp.f32 %v1026_v19 }
 0x145   : > { %v1046_v30 = vmul.f32 %v2502_v50, %v3062_v39  ;;  %v2504_v34 = vpop.eup %2503  ;;  %v2441_v50 = vld [vmem:[%s3327_s12 + $0x10] sm:$0xff]  }
 0x146   : > { %v2506_v0 = vpop.eup %2505  ;;  %v1413_v33 = vadd.f32 1.0, %v2504_v34  ;;  %v2444_v34 = vld [vmem:[%s3328_s13 + $0x8] sm:$0xff]  }
 0x147   : > { %v1053_v31 = vpack.c.bf16 %v1046_v30, %v1045_v36  ;;  %v1048_v61 = vmul.f32 %v2506_v0, %v3065_v62  ;;  %v2418_v62 = vld [vmem:[%s3325_s10 + $0xb0] sm:$0xff]   ;;  %v2443_v30 = vld [vmem:[%s3327_s12 + $0x8] sm:$0xff]   ;;  %v2445_v0 = vld [vmem:[%s3327_s12] sm:$0xff]  }
 0x148   : > { %v2508_v32 = vpop.eup %2507  ;;  %2519 = vrcp.f32 %v1413_v33  ;;  %v2442_v36 = vld [vmem:[%s3328_s13 + $0x10] sm:$0xff]   ;;  %v2100_v33 = vld [vmem:[%s3322_s7] ss:$0 sm:$0xff] }
 0x149   : > { %2290 = vmatprep.mubr.bf16.mxu1 %v1053_v31  ;;  %v1047_v35 = vmul.f32 %v2508_v32, %v3081_v42  ;;  %v2446_v31 = vld [vmem:[%s3328_s13] sm:$0xff]  }
 0x14b   : > { %v1054_v58 = vpack.c.bf16 %v1048_v61, %v1047_v35 }
 0x14c   : > { %v2510_v59 = vpop.eup %2509 }
 0x14d   : > { %v2512_v39 = vpop.eup %2511  ;;  %v1027_v16 = vadd.f32 1.0, %v2510_v59  ;;  %2291 = vmatmul.mubr.bf16.vlgmr.msra.gmra.mxu1 %v1054_v58 }
 0x14e   : > { %v1028_v17 = vadd.f32 1.0, %v2512_v39  ;;  %2223 = vmatpush3.bf16.msra.mxu1 %v2416_v38 }
 0x14f   : > { %v2514_v28 = vpop.eup %2513  ;;  %2521 = vrcp.f32 %v1027_v16  ;;  %2224 = vmatprep.subr.bf16.mxu1 %v2417_v24 }
 0x150   : > { %v2516_v42 = vpop.eup %2515  ;;  %2523 = vrcp.f32 %v1028_v17  ;;  %v1049_v47 = vmul.f32 %v2514_v28, %v3097_v55  ;;  %v2422_v55 = vld [vmem:[%s3325_s10 + $0xa0] sm:$0xff]  }
 0x151   : > { %v2518_v40 = vpop.eup %2517  ;;  %v1412_v56 = vadd.f32 1.0, %v2516_v42 }
 0x152   : > { %v1050_v48 = vmul.f32 %v2518_v40, %v3102_v26  ;;  %2225 = vmatpush3.bf16.msra.mxu1 %v2418_v62  ;;  %v2423_v26 = vld [vmem:[%s3325_s10 + $0xd8] sm:$0xff]  }
 0x153   : > { %2226 = vmatprep.subr.bf16.mxu1 %v2419_v10  ;;  %2525 = vrcp.f32 %v1412_v56 }
 0x154   : > { %v1055_v53 = vpack.c.bf16 %v1050_v48, %v1049_v47 }
 0x155   : > { %v2520_v54 = vpop.eup %2519 }
 0x156   : > { %2294 = vmatprep.mubr.bf16.mxu1 %v1055_v53  ;;  %2227 = vmatpush3.bf16.msra.mxu1 %v2420_v5  ;;  %v1425_v4 = vmul.f32 %v2520_v54, %v2929_v41  ;;  %v2428_v41 = vld [vmem:[%s3325_s10 + $0x88] sm:$0xff]  }
 0x157   : > { %2228 = vmatprep.subr.bf16.mxu1 %v2421_v63 }
 0x158   : > { %v1429_v9 = vpack.c.bf16 %v1425_v4, %v1425_v4 }
 0x15a   : > { %2229 = vmatpush3.bf16.msra.mxu1 %v2422_v55 }
 0x15b   : > { %2230 = vmatprep.subr.bf16.mxu1 %v2423_v26 }
 0x15c   : > { %v2522_v1 = vpop.eup %2521 }
 0x15d   : > { %v2524_v20 = vpop.eup %2523  ;;  %v1051_v23 = vmul.f32 %v2522_v1, %v3119_v13  ;;  %v2436_v13 = vld [vmem:[%s3328_s13 + $0x28] sm:$0xff]  }
 0x15e   : > { %v1052_v44 = vmul.f32 %v2524_v20, %v3122_v22  ;;  %2231 = vmatpush3.bf16.msra.mxu1 %v2424_v60  ;;  %2303 = vmatpush3.bf16.msra.mxu0 %v2436_v13 }
 0x15f   : > { %2232 = vmatprep.subr.bf16.mxu1 %v2425_v2  ;;  %2304 = vmatprep.subr.bf16.mxu0 %v2563_v18 }
 0x160   : > { %v1056_v8 = vpack.c.bf16 %v1052_v44, %v1051_v23  ;;  %v2526_v6 = vpop.eup %2525 }
 0x161   : > { %v1424_v43 = vmul.f32 %v2526_v6, %v2927_v37  ;;  %v2433_v37 = vld [vmem:[%s3327_s12 + $0x30] sm:$0xff]  }
 0x162   : > { %2295 = vmatmul.mubr.bf16.gmra.mxu1 %v1056_v8  ;;  %2305 = vmatpush3.bf16.msra.mxu0 %v2438_v52 }
 0x163   : > { %1759 = vmatprep.mubr.bf16.mxu1 %v1429_v9  ;;  %2233 = vmatpush3.bf16.msra.mxu1 %v2426_v51  ;;  %v1428_v11 = vpack.c.bf16 %v1424_v43, %v1424_v43  ;;  %v1494_v51 = vld [vmem:[%s3326_s11] sm:$0x1] }
 0x164   : > { %2234 = vmatprep.subr.bf16.mxu1 %v2427_v7  ;;  %2306 = vmatprep.subr.bf16.mxu0 %v2563_v18 }
 0x166   : > { %2307 = vmatpush3.bf16.msra.mxu0 %v2440_v29 }
 0x167   : > { %2235 = vmatpush3.bf16.msra.mxu1 %v2428_v41  ;;  %2308 = vmatprep.subr.bf16.mxu0 %v2563_v18 }
 0x168   : > { %2236 = vmatprep.subr.bf16.mxu1 %v2429_v25 }
 0x16a   : > { %2309 = vmatpush3.bf16.msra.mxu0 %v2442_v36 }
 0x16b   : > { %2237 = vmatpush3.bf16.msra.mxu1 %v2430_v27  ;;  %2310 = vmatprep.subr.bf16.mxu0 %v2563_v18 }
 0x16c   : > { %2318 = vmatprep.subr.bf16.mxu1 %v2628_v21 }
 0x16e   : > { %1760 = vmatmul.mubr.bf16.vlgmr.msra.gmra.mxu1 %v1428_v11  ;;  %2311 = vmatpush3.bf16.msra.mxu0 %v2444_v34 }
 0x16f   : > { %2319 = vmatpush3.bf16.msra.mxu1 %v2431_v49  ;;  %2334 = vmatprep.mubr.msk.bf16.mxu1 %vm2629_vm5, %v2628_v21 }
 0x170   : > { %2320 = vmatprep.subr.bf16.mxu1 %v2628_v21  ;;  %2312 = vmatprep.subr.bf16.mxu0 %v2563_v18 }
 0x172   : > { %2313 = vmatpush3.bf16.msra.mxu0 %v2446_v31 }
 0x173   : > { %2321 = vmatpush3.bf16.msra.mxu1 %v2433_v37 }
 0x174   : > { %2322 = vmatprep.subr.bf16.mxu1 %v2628_v21  ;;  %v2439_v21 = vld [vmem:[%s3327_s12 + $0x18] sm:$0xff]  }
 0x177   : > { %2323 = vmatpush3.bf16.msra.mxu1 %v2435_v15 }
 0x178   : > { %2324 = vmatprep.subr.bf16.mxu1 %v2563_v18 }
 0x17b   : > { %2325 = vmatpush3.bf16.msra.mxu1 %v2437_v45 }
 0x17c   : > { %2326 = vmatprep.subr.bf16.mxu1 %v2563_v18 }
 0x17f   : > { %2327 = vmatpush3.bf16.msra.mxu1 %v2439_v21 }
 0x180   : > { %2328 = vmatprep.subr.bf16.mxu1 %v2563_v18 }
 0x183   : > { %2329 = vmatpush3.bf16.msra.mxu1 %v2441_v50 }
 0x184   : > { %2330 = vmatprep.subr.bf16.mxu1 %v2563_v18 }
 0x187   : > { %2331 = vmatpush3.bf16.msra.mxu1 %v2443_v30 }
 0x188   : > { %2332 = vmatprep.subr.bf16.mxu1 %v2563_v18 }
 0x18b   : > { %2333 = vmatpush3.bf16.msra.mxu1 %v2445_v0 }
 0x1dd   : > { %v2216_v22 = vpop.f32.mrf.mxu0 }
 0x1df   : > { %v2217_v46 = vpop.f32.mrf.mxu0 }
 0x1e0   : > { %v3213_v3 = vadd.f32 %v2217_v46, %v2216_v22 }
 0x1e1   : > { %v2219_v57 = vpop.f32.mrf.mxu0 }
 0x1e2   : > { %v1722_v41 = vadd.f32 %v3213_v3, %v1494_v51 }
 0x1e3   : > { %v2220_v19 = vpop.f32.mrf.mxu0 }
 0x20d   : > { %v2292_v32 = vpop.f32.mrf.mxu1 }
 0x20e   : > { %v3244_v59 = vadd.f32 %v2292_v32, %v2100_v33 }
 0x20f   : > { %v1162_v35 = vpop.f32.mrf.mxu1 }
 0x210   : > { %v3242_v61 = vadd.f32 %v2100_v33, %v1162_v35  ;;  %v2111_v17 = vmul.f32 -1.442695, %v3244_v59 }
 0x211   : > { %v2293_v38 = vpop.f32.mrf.mxu1 }
 0x212   : > { %v2109_v58 = vmul.f32 -1.442695, %v3242_v61  ;;  %v3248_v28 = vadd.f32 %v2293_v38, %v2100_v33 }
 0x213   : > { %v1165_v24 = vpop.f32.mrf.mxu1 }
 0x214   : > { %v1166_v39 = vadd.f32 %v2100_v33, %v1165_v24  ;;  %2527 = vpow2.f32 %v2109_v58  ;;  %v2112_v62 = vmul.f32 -1.442695, %v3248_v28 }
 0x216   : > { %v2110_v16 = vmul.f32 -1.442695, %v1166_v39 }
 0x218   : > { %2529 = vpow2.f32 %v2110_v16 }
 0x219   : > { %2531 = vpow2.f32 %v2111_v17 }
 0x21a   : > { %2533 = vpow2.f32 %v2112_v62 }
 0x221   : > { %v2528_v47 = vpop.eup %2527 }
 0x222   : > { %v2296_v42 = vpop.f32.mrf.mxu1  ;;  %v1217_v54 = vadd.f32 1.0, %v2528_v47 }
 0x223   : > { %v3251_v10 = vadd.f32 %v2296_v42, %v2100_v33 }
 0x224   : > { %v1178_v40 = vpop.f32.mrf.mxu1 }
 0x225   : > { %v2115_v48 = vmul.f32 -1.442695, %v3251_v10  ;;  %v1179_v5 = vadd.f32 %v2100_v33, %v1178_v40  ;;  %v2530_v56 = vpop.eup %2529 }
 0x226   : > { %v2297_v53 = vpop.f32.mrf.mxu1  ;;  %v1218_v63 = vadd.f32 1.0, %v2530_v56  ;;  %v2532_v1 = vpop.eup %2531 }
 0x227   : > { %v2113_v55 = vmul.f32 -1.442695, %v1179_v5  ;;  %v3254_v26 = vadd.f32 %v2297_v53, %v2100_v33  ;;  %2535 = vpow2.f32 %v2115_v48  ;;  %v1219_v23 = vadd.f32 1.0, %v2532_v1  ;;  %v2534_v44 = vpop.eup %2533 }
 0x228   : > { %v1181_v60 = vpop.f32.mrf.mxu1  ;;  %2537 = vrcp.f32 %v1218_v63  ;;  %v1220_v7 = vadd.f32 1.0, %v2534_v44 }
 0x229   : > { %v2116_v2 = vmul.f32 -1.442695, %v3254_v26  ;;  %v1182_v20 = vadd.f32 %v2100_v33, %v1181_v60  ;;  %2539 = vpow2.f32 %v2113_v55 }
 0x22b   : > { %2541 = vpow2.f32 %v2116_v2  ;;  %v2114_v4 = vmul.f32 -1.442695, %v1182_v20  ;;  %v1984_v2 = vld [vmem:[%s3329_s14] sm:$0x1] }
 0x22c   : > { %2543 = vrcp.f32 %v1217_v54 }
 0x22d   : > { %2545 = vpow2.f32 %v2114_v4 }
 0x22e   : > { %v2238_v8 = vpop.f32.mrf.mxu1  ;;  %2547 = vrcp.f32 %v1219_v23 }
 0x22f   : > { %2549 = vrcp.f32 %v1220_v7 }
 0x230   : > { %v2239_v9 = vpop.f32.mrf.mxu1 }
 0x231   : > { %v2240_v25 = vadd.f32 %v2239_v9, %v2238_v8 }
 0x232   : > { %v2241_v6 = vpop.f32.mrf.mxu1 }
 0x233   : > { %v1762_v27 = vadd.f32 %v2240_v25, %v1722_v41 }
 0x234   : > { %v2242_v43 = vpop.f32.mrf.mxu1  ;;  %v2536_v11 = vpop.eup %2535 }
 0x235   : > { %v2161_v49 = vmul.f32 -1.442695, %v1762_v27  ;;  %v2538_v12 = vpop.eup %2537  ;;  %v1223_v15 = vadd.f32 1.0, %v2536_v11 }
 0x236   : > { %v2540_v37 = vpop.eup %2539  ;;  %v1242_v18 = vmul.f32 %v2538_v12, %v1166_v39 }
 0x237   : > { %2551 = vpow2.f32 %v2161_v49  ;;  %v1221_v13 = vadd.f32 1.0, %v2540_v37 }
 0x238   : > { %v2542_v14 = vpop.eup %2541 }
 0x239   : > { %v2544_v22 = vpop.eup %2543  ;;  %2553 = vrcp.f32 %v1221_v13  ;;  %v1224_v52 = vadd.f32 1.0, %v2542_v14 }
 0x23a   : > { %v2546_v45 = vpop.eup %2545  ;;  %v1241_v3 = vmul.f32 %v2544_v22, %v3242_v61  ;;  %2555 = vrcp.f32 %v1223_v15 }
 0x23b   : > { %v1222_v46 = vadd.f32 1.0, %v2546_v45  ;;  %v2548_v57 = vpop.eup %2547 }
 0x23c   : > { %v1249_v21 = vadd.f32 %v1242_v18, %v1241_v3  ;;  %v1243_v29 = vmul.f32 %v2548_v57, %v3244_v59  ;;  %v2550_v19 = vpop.eup %2549 }
 0x23d   : > { %2557 = vrcp.f32 %v1222_v46  ;;  %v1244_v30 = vmul.f32 %v2550_v19, %v3248_v28 }
 0x23e   : > { %2559 = vrcp.f32 %v1224_v52  ;;  %v1250_v50 = vadd.f32 %v1249_v21, %v1243_v29 }
 0x240   : > { %v1251_v0 = vadd.f32 %v1250_v50, %v1244_v30 }
 0x244   : > { %v2552_v36 = vpop.eup %2551 }
 0x245   : > { %v1770_v34 = vadd.f32 1.0, %v2552_v36 }
 0x246   : > { %v2554_v31 = vpop.eup %2553 }
 0x247   : > { %2561 = vrcp.f32 %v1770_v34  ;;  %v1245_v32 = vmul.f32 %v2554_v31, %v1179_v5  ;;  %v2556_v33 = vpop.eup %2555 }
 0x248   : > { %v1247_v24 = vmul.f32 %v2556_v33, %v3251_v10 }
 0x249   : > { %v1252_v61 = vadd.f32 %v1251_v0, %v1245_v32 }
 0x24a   : > { %v2558_v35 = vpop.eup %2557 }
 0x24b   : > { %v1246_v38 = vmul.f32 %v2558_v35, %v1182_v20  ;;  %v2560_v58 = vpop.eup %2559 }
 0x24c   : > { %v1248_v59 = vmul.f32 %v2560_v58, %v3254_v26 }
 0x24d   : > { %v1253_v39 = vadd.f32 %v1252_v61, %v1246_v38 }
 0x24f   : > { %v1254_v16 = vadd.f32 %v1253_v39, %v1247_v24 }
 0x251   : > { %v1255_v17 = vadd.f32 %v1254_v16, %v1248_v59 }
 0x253   : > { %v1256_v62 = vrot.slane %v1255_v17, 4 }
 0x254   : > { %v2562_v28 = vpop.eup %2561 }
 0x255   : > { %v1257_v42 = vadd.f32 %v1256_v62, %v1255_v17  ;;  %v1773_v40 = vmul.f32 %v2562_v28, %v1762_v27 }
 0x257   : > { %v1791_v47 = vpack.c.bf16 %v1773_v40, %v1773_v40  ;;  %v1258_v48 = vrot.slane %v1257_v42, 2 }
 0x259   : > { %v1259_v5 = vadd.f32 %v1258_v48, %v1257_v42  ;;  %2315 = vmatmul.mubr.bf16.vlgmr.msra.gmra.mxu0 %v1791_v47 }
 0x25b   : > { %v1260_v56 = vrot.slane %v1259_v5, 1 }
 0x25d   : > { %v1261_v53 = vadd.f32 %v1260_v56, %v1259_v5 }
 0x25f   : > { %v1262_v63 = vmul.f32 0.015625, %v1261_v53 }
 0x261   : > { %v1774_v55 = vpack.c.bf16 %v1262_v63, %v1262_v63 }
 0x263   : > { %2335 = vmatmul.mubr.bf16.vlgmr.msra.gmra.mxu1 %v1774_v55 }
 0x319   : > { %v1890_v10 = vpop.f32.mrf.mxu0 }
 0x31b   : > { %v2316_v54 = vpop.f32.mrf.mxu0 }
 0x31d   : > { %v1893_v26 = vpop.f32.mrf.mxu0 }
 0x31f   : > { %v2317_v60 = vpop.f32.mrf.mxu0 }
 0x323   : > { %v1978_v1 = vpop.f32.mrf.mxu1 }
 0x324   : > { %v1979_v20 = vadd.f32 %v1978_v1, %v1890_v10 }
 0x325   : > { %v2336_v4 = vpop.f32.mrf.mxu1 }
 0x326   : > { %v1985_v23 = vadd.f32 %v1984_v2, %v1979_v20 }
 0x327   : > { %v1981_v44 = vpop.f32.mrf.mxu1 }
 0x328   : > { %1987 = vst.msk [vmem:[%s497_s24] sm:$0x1] %vm1986_vm6, %v1985_v23 }
 0x329   : > { %v2337_v51 = vpop.f32.mrf.mxu1 }
 0x32a   : > { %2577 = shalt.err (!%p2574_p3)
}
 0x32b   : > { %s2578_s20 = scalar_lea.hbm %s3274_s17, 16  ;;  %s2582_s18 = scalar_lea.hbm %s3330_s15, 32 }
 0x32c   : > { %p2579_p4 = scmp.ne.s32.totalorder %s3274_s17, %s2578_s20  ;;  %p2583_p9 = scmp.lt.s32.totalorder %s3274_s17, %s3330_s15 }
 0x32d   : > { %p2584_p10 = scmp.lt.s32.totalorder %s2582_s18, %s2578_s20 }
 0x32e   : > { %p2580_p7 = pnand %p2579_p4, %p2749_p5 }
 0x32f   : > { %p2585_p11 = por %p2584_p10, %p2583_p9 }
 0x330   : > { %p2581_p8 = pneg %p2580_p7 }
 0x332   : > { %p2586_p12 = pnand %p2585_p11, %p2581_p8 }
 0x334   : > { %2589 = shalt.err (!%p2586_p12)
}
 0x335   : > { %2338 = dma.vmem_to_hbm [thread:$0]  (%p2749_p5), %s3276_s29, 16, %s3274_s17, %s1989_s22  }
 0x336 PF: > { %s3343_s23 = sld [smem:[#allocation6_spill]]  ;;  %p2344_p13 = scmp.ge.s32.totalorder %s2624_s21, 2 }
 0x338   : > { %p2341_p0 = pnand %p2344_p13, %p2753_p6 }
 0x33a   : > { %p2342_p1 = pneg %p2341_p0 }
 0x33c   : > { %s2013_s16 = sand.u32 1, %s3343_s23  }
 0x33d   : > { %s2014_s26 = scalar_lea.sflag [#allocation4], %s2013_s16 }
 0x33e   : > { %2607 = dma.done.wait (%p2342_p1), %s2014_s26, 16  }
 0x33f   : > { %2609 = vsyncadd (%p2342_p1), %s2014_s26, 4294967280  ;;  %s3345_s21 = sld [smem:[#allocation8_spill]]  ;;  %s3348_s18 = smov %s2616_s19 }
 0x340   : > { %s3346_s20 = sld [smem:[#allocation7_spill]] }
 0x341   : > { %s3347_s24 = sld [smem:[#allocation9_spill]] }
 0x345   : > { %p25_p2 = scmp.ge.s32.totalorder %s3345_s21, 4  }
 0x346   : > { %s3349_s19 = smov %s3346_s20 }
 0x347   : > { %s3350_s20 = smov %s3347_s24  ;;  %27 = sbr.rel (!%p25_p2) target bundleno = 3 (0x3), region = 120 }
 0x34c   :  { %2018 = vsyncpa [#allocation4], 1 }
 0x34d   :  { %2020 = vsyncpa [#allocation4 + $0x1], 1 }

</bundles_post_ra>
